<compile_context>
chip_gen: v6e
topology: v6e:2x2x1
jax: 0.10.0
libtpu: 0.0.40
codegen_flags: <defaults>
</compile_context>

<pallas_src>
import functools

import jax
import jax.numpy as jnp
from jax.experimental import pallas as pl
from jax.experimental.pallas import tpu as pltpu


D_IN = 256
D_OUT = 16
# (K_padded, N_padded) per layer; each K equals the previous layer's padded N.
_PADDED_DIMS = ((256, 512), (512, 256), (256, 128), (128, 128))
D_OUT_PAD = _PADDED_DIMS[-1][1]  # 128 -> lane-dense output tile


def _round_up(x, m):
    return (x + m - 1) // m * m


def encoder_kernel(x_ref,
                   w1_ref, b1_ref,
                   w2_ref, b2_ref,
                   w3_ref, b3_ref,
                   w4_ref, b4_ref,
                   o_ref):
    """All four layers fused; one batch tile per grid step, weights resident."""
    cdt = w1_ref.dtype  # MXU input dtype (f32 or bf16); accumulation is f32.
    h = x_ref[...].astype(cdt)

    # Layer 1: 256 -> 512 (padded), ReLU in f32, cast back for next MXU pass.
    h = jnp.dot(h, w1_ref[...], preferred_element_type=jnp.float32) + b1_ref[...]
    h = jnp.maximum(h, 0.0).astype(cdt)

    # Layer 2: 512 -> 256 (padded).
    h = jnp.dot(h, w2_ref[...], preferred_element_type=jnp.float32) + b2_ref[...]
    h = jnp.maximum(h, 0.0).astype(cdt)

    # Layer 3: 256 -> 128 (padded).
    h = jnp.dot(h, w3_ref[...], preferred_element_type=jnp.float32) + b3_ref[...]
    h = jnp.maximum(h, 0.0).astype(cdt)

    # Layer 4: 128 -> 128 (padded), sigmoid in f32, lane-dense store.
    logits = jnp.dot(h, w4_ref[...], preferred_element_type=jnp.float32) + b4_ref[...]
    o_ref[...] = jax.nn.sigmoid(logits).astype(o_ref.dtype)


def prepare_params(params, compute_dtype):
    """Zero-pad PyTorch-shaped (w:[in,out], b:[out]) params to MXU-friendly tiles."""
    padded = []
    for (w, b), (k_pad, n_pad) in zip(params, _PADDED_DIMS):
        k, n = w.shape
        w_p = jnp.zeros((k_pad, n_pad), compute_dtype).at[:k, :n].set(
            w.astype(compute_dtype))
        b_p = jnp.zeros((1, n_pad), jnp.float32).at[:, :n].set(
            b.astype(jnp.float32).reshape(1, -1))
        padded.append((w_p, b_p))
    return padded


def encoder_forward(x, params, *, bm=256, compute_dtype=jnp.float32):
    """x: [B, 256] float32 -> [B, 16] float32."""
    B, d_in = x.shape
    assert d_in == D_IN

    (w1, b1), (w2, b2), (w3, b3), (w4, b4) = prepare_params(params, compute_dtype)

    # Clamp the batch tile for small B (multiple of 32 keeps any dtype packing
    # happy), then pad the batch to a whole number of tiles.
    bm = min(bm, _round_up(B, 32))
    b_pad = _round_up(B, bm)
    x_p = x if b_pad == B else jnp.pad(x, ((0, b_pad - B), (0, 0)))
    x_p = x_p.astype(compute_dtype)

    def full(shape):
        return pl.BlockSpec(shape, lambda i: (0,) * len(shape))

    grid = (b_pad // bm,)
    out = pl.pallas_call(
        encoder_kernel,
        out_shape=jax.ShapeDtypeStruct((b_pad, D_OUT_PAD), jnp.float32),
        grid_spec=pltpu.PrefetchScalarGridSpec(
            num_scalar_prefetch=0,
            grid=grid,
            in_specs=[
                pl.BlockSpec((bm, D_IN), lambda i: (i, 0)),
                full(w1.shape), full(b1.shape),
                full(w2.shape), full(b2.shape),
                full(w3.shape), full(b3.shape),
                full(w4.shape), full(b4.shape),
            ],
            out_specs=pl.BlockSpec((bm, D_OUT_PAD), lambda i: (i, 0)),
        ),
        compiler_params=pltpu.CompilerParams(
            dimension_semantics=("parallel",),   # batch axis shards across TCs
            vmem_limit_bytes=64 << 20,           # headroom for large bm tiles
        ),
    )(x_p, w1, b1, w2, b2, w3, b3, w4, b4)

    # Slice off batch padding and the zero-padded output lanes (16 real cols).
    return out[:B, :D_OUT]


def init_linear(key, fan_in, fan_out):
    # PyTorch default init: U(-1/sqrt(fan_in), 1/sqrt(fan_in)).
    kw, kb = jax.random.split(key)
    bound = 1.0 / jnp.sqrt(fan_in)
    w = jax.random.uniform(kw, (fan_in, fan_out), jnp.float32, -bound, bound)
    b = jax.random.uniform(kb, (fan_out,), jnp.float32, -bound, bound)
    return w, b


def reference_forward(x, params):
    (w1, b1), (w2, b2), (w3, b3), (w4, b4) = params
    h = jnp.maximum(x @ w1 + b1, 0.0)
    h = jnp.maximum(h @ w2 + b2, 0.0)
    h = jnp.maximum(h @ w3 + b3, 0.0)
    return jax.nn.sigmoid(h @ w4 + b4)


if __name__ == "__main__":
    key = jax.random.PRNGKey(0)
    k0, k1, k2, k3, kx = jax.random.split(key, 5)

    params = (
        init_linear(k0, 256, 500),
        init_linear(k1, 500, 250),
        init_linear(k2, 250, 120),
        init_linear(k3, 120, 16),
    )

    # f32 path (exact match to reference).
    B = 64
    x = jax.random.normal(kx, (B, 256), jnp.float32)
    fwd_f32 = jax.jit(functools.partial(encoder_forward, bm=256,
                                        compute_dtype=jnp.float32))
    out = jax.block_until_ready(fwd_f32(x, params))
    ref = jax.block_until_ready(reference_forward(x, params))
    assert out.shape == (B, 16)
    assert jnp.allclose(out, ref, atol=1e-4, rtol=1e-4), \
        float(jnp.max(jnp.abs(out - ref)))

    # bf16 MXU fast path (v6e/v7x) + non-tile-divisible batch exercising the
    # pad-and-slice path; accumulation stays f32 so error is small.
    B2 = 200
    x2 = jax.random.normal(jax.random.split(kx)[0], (B2, 256), jnp.float32)
    fwd_bf16 = jax.jit(functools.partial(encoder_forward, bm=256,
                                         compute_dtype=jnp.bfloat16))
    out_bf16 = jax.block_until_ready(fwd_bf16(x2, params))
    ref2 = jax.block_until_ready(reference_forward(x2, params))
    assert out_bf16.shape == (B2, 16)
    assert jnp.allclose(out_bf16, ref2, atol=5e-2, rtol=0.0), \
        float(jnp.max(jnp.abs(out_bf16 - ref2)))

    print("KERNEL_OK")
</pallas_src>

<mosaic_0001>
module attributes {stable_mosaic.version = 11 : i64} {
  func.func @encoder_kernel(%arg0: i32, %arg1: memref<64x256xf32, #tpu.memory_space<vmem>>, %arg2: memref<256x512xf32, #tpu.memory_space<vmem>>, %arg3: memref<1x512xf32, #tpu.memory_space<vmem>>, %arg4: memref<512x256xf32, #tpu.memory_space<vmem>>, %arg5: memref<1x256xf32, #tpu.memory_space<vmem>>, %arg6: memref<256x128xf32, #tpu.memory_space<vmem>>, %arg7: memref<1x128xf32, #tpu.memory_space<vmem>>, %arg8: memref<128x128xf32, #tpu.memory_space<vmem>>, %arg9: memref<1x128xf32, #tpu.memory_space<vmem>>, %arg10: memref<64x128xf32, #tpu.memory_space<vmem>>) attributes {dimension_semantics = [#tpu.dimension_semantics<parallel>], iteration_bounds = array<i64: 1>, scalar_prefetch = 0 : i64, scratch_operands = 0 : i64, tpu.core_type = #tpu.core_type<tc>, window_params = [{transform_indices = @transform_0, window_bounds = array<i64: 64, 256>}, {pipeline_mode = #tpu.pipeline_mode<synchronous>, transform_indices = @transform_1, window_bounds = array<i64: 256, 512>}, {pipeline_mode = #tpu.pipeline_mode<synchronous>, transform_indices = @transform_2, window_bounds = array<i64: 1, 512>}, {pipeline_mode = #tpu.pipeline_mode<synchronous>, transform_indices = @transform_3, window_bounds = array<i64: 512, 256>}, {pipeline_mode = #tpu.pipeline_mode<synchronous>, transform_indices = @transform_4, window_bounds = array<i64: 1, 256>}, {pipeline_mode = #tpu.pipeline_mode<synchronous>, transform_indices = @transform_5, window_bounds = array<i64: 256, 128>}, {pipeline_mode = #tpu.pipeline_mode<synchronous>, transform_indices = @transform_6, window_bounds = array<i64: 1, 128>}, {pipeline_mode = #tpu.pipeline_mode<synchronous>, transform_indices = @transform_7, window_bounds = array<i64: 128, 128>}, {pipeline_mode = #tpu.pipeline_mode<synchronous>, transform_indices = @transform_8, window_bounds = array<i64: 1, 128>}, {transform_indices = @transform_9, window_bounds = array<i64: 64, 128>}]} {
    %c0 = arith.constant 0 : index
    %c0_0 = arith.constant 0 : index
    %0 = vector.load %arg1[%c0, %c0_0] : memref<64x256xf32, #tpu.memory_space<vmem>>, vector<64x256xf32>
    %c0_1 = arith.constant 0 : index
    %c0_2 = arith.constant 0 : index
    %1 = vector.load %arg2[%c0_1, %c0_2] : memref<256x512xf32, #tpu.memory_space<vmem>>, vector<256x512xf32>
    %cst = arith.constant dense<0.000000e+00> : vector<64x512xf32>
    %2 = tpu.matmul %0, %1, %cst {dimension_numbers = #tpu.dot_dimension_numbers<[1], [0], [0], [1], [0, 0, 1, 1], [], []>} : vector<64x256xf32>, vector<256x512xf32>, vector<64x512xf32> -> vector<64x512xf32>
    %c0_3 = arith.constant 0 : index
    %c0_4 = arith.constant 0 : index
    %3 = vector.load %arg3[%c0_3, %c0_4] : memref<1x512xf32, #tpu.memory_space<vmem>>, vector<1x512xf32>
    %4 = vector.broadcast %3 : vector<1x512xf32> to vector<64x512xf32>
    %5 = arith.addf %2, %4 : vector<64x512xf32>
    %cst_5 = arith.constant 0.000000e+00 : f32
    %6 = vector.broadcast %cst_5 : f32 to vector<64x512xf32>
    %7 = arith.maximumf %5, %6 : vector<64x512xf32>
    %c0_6 = arith.constant 0 : index
    %c0_7 = arith.constant 0 : index
    %8 = vector.load %arg4[%c0_6, %c0_7] : memref<512x256xf32, #tpu.memory_space<vmem>>, vector<512x256xf32>
    %cst_8 = arith.constant dense<0.000000e+00> : vector<64x256xf32>
    %9 = tpu.matmul %7, %8, %cst_8 {dimension_numbers = #tpu.dot_dimension_numbers<[1], [0], [0], [1], [0, 0, 1, 1], [], []>} : vector<64x512xf32>, vector<512x256xf32>, vector<64x256xf32> -> vector<64x256xf32>
    %c0_9 = arith.constant 0 : index
    %c0_10 = arith.constant 0 : index
    %10 = vector.load %arg5[%c0_9, %c0_10] : memref<1x256xf32, #tpu.memory_space<vmem>>, vector<1x256xf32>
    %11 = vector.broadcast %10 : vector<1x256xf32> to vector<64x256xf32>
    %12 = arith.addf %9, %11 : vector<64x256xf32>
    %cst_11 = arith.constant 0.000000e+00 : f32
    %13 = vector.broadcast %cst_11 : f32 to vector<64x256xf32>
    %14 = arith.maximumf %12, %13 : vector<64x256xf32>
    %c0_12 = arith.constant 0 : index
    %c0_13 = arith.constant 0 : index
    %15 = vector.load %arg6[%c0_12, %c0_13] : memref<256x128xf32, #tpu.memory_space<vmem>>, vector<256x128xf32>
    %cst_14 = arith.constant dense<0.000000e+00> : vector<64x128xf32>
    %16 = tpu.matmul %14, %15, %cst_14 {dimension_numbers = #tpu.dot_dimension_numbers<[1], [0], [0], [1], [0, 0, 1, 1], [], []>} : vector<64x256xf32>, vector<256x128xf32>, vector<64x128xf32> -> vector<64x128xf32>
    %c0_15 = arith.constant 0 : index
    %c0_16 = arith.constant 0 : index
    %17 = vector.load %arg7[%c0_15, %c0_16] : memref<1x128xf32, #tpu.memory_space<vmem>>, vector<1x128xf32>
    %18 = vector.broadcast %17 : vector<1x128xf32> to vector<64x128xf32>
    %19 = arith.addf %16, %18 : vector<64x128xf32>
    %cst_17 = arith.constant 0.000000e+00 : f32
    %20 = vector.broadcast %cst_17 : f32 to vector<64x128xf32>
    %21 = arith.maximumf %19, %20 : vector<64x128xf32>
    %c0_18 = arith.constant 0 : index
    %c0_19 = arith.constant 0 : index
    %22 = vector.load %arg8[%c0_18, %c0_19] : memref<128x128xf32, #tpu.memory_space<vmem>>, vector<128x128xf32>
    %cst_20 = arith.constant dense<0.000000e+00> : vector<64x128xf32>
    %23 = tpu.matmul %21, %22, %cst_20 {dimension_numbers = #tpu.dot_dimension_numbers<[1], [0], [0], [1], [0, 0, 1, 1], [], []>} : vector<64x128xf32>, vector<128x128xf32>, vector<64x128xf32> -> vector<64x128xf32>
    %c0_21 = arith.constant 0 : index
    %c0_22 = arith.constant 0 : index
    %24 = vector.load %arg9[%c0_21, %c0_22] : memref<1x128xf32, #tpu.memory_space<vmem>>, vector<1x128xf32>
    %25 = vector.broadcast %24 : vector<1x128xf32> to vector<64x128xf32>
    %26 = arith.addf %23, %25 : vector<64x128xf32>
    %27 = arith.negf %26 : vector<64x128xf32>
    %28 = math.exp %27 : vector<64x128xf32>
    %cst_23 = arith.constant 1.000000e+00 : f32
    %29 = vector.broadcast %cst_23 : f32 to vector<64x128xf32>
    %30 = arith.addf %29, %28 : vector<64x128xf32>
    %31 = arith.divf %29, %30 : vector<64x128xf32>
    %c0_24 = arith.constant 0 : index
    %c0_25 = arith.constant 0 : index
    %32 = vector.load %arg10[%c0_24, %c0_25] : memref<64x128xf32, #tpu.memory_space<vmem>>, vector<64x128xf32>
    tpu.vector_store %arg10[%c0_24, %c0_25], %31 {strides = array<i32>} : memref<64x128xf32, #tpu.memory_space<vmem>>, vector<64x128xf32>,
    return
  }
  func.func @transform_0(%arg0: i32) -> (i32, i32) {
    %c0_i32 = arith.constant 0 : i32
    %c0_i32_0 = arith.constant 0 : i32
    return %arg0, %c0_i32 : i32, i32
  }
  func.func @transform_1(%arg0: i32) -> (i32, i32) {
    %c0_i32 = arith.constant 0 : i32
    %c0_i32_0 = arith.constant 0 : i32
    %c0_i32_1 = arith.constant 0 : i32
    return %c0_i32, %c0_i32_0 : i32, i32
  }
  func.func @transform_2(%arg0: i32) -> (i32, i32) {
    %c0_i32 = arith.constant 0 : i32
    %c0_i32_0 = arith.constant 0 : i32
    %c0_i32_1 = arith.constant 0 : i32
    return %c0_i32, %c0_i32_0 : i32, i32
  }
  func.func @transform_3(%arg0: i32) -> (i32, i32) {
    %c0_i32 = arith.constant 0 : i32
    %c0_i32_0 = arith.constant 0 : i32
    %c0_i32_1 = arith.constant 0 : i32
    return %c0_i32, %c0_i32_0 : i32, i32
  }
  func.func @transform_4(%arg0: i32) -> (i32, i32) {
    %c0_i32 = arith.constant 0 : i32
    %c0_i32_0 = arith.constant 0 : i32
    %c0_i32_1 = arith.constant 0 : i32
    return %c0_i32, %c0_i32_0 : i32, i32
  }
  func.func @transform_5(%arg0: i32) -> (i32, i32) {
    %c0_i32 = arith.constant 0 : i32
    %c0_i32_0 = arith.constant 0 : i32
    %c0_i32_1 = arith.constant 0 : i32
    return %c0_i32, %c0_i32_0 : i32, i32
  }
  func.func @transform_6(%arg0: i32) -> (i32, i32) {
    %c0_i32 = arith.constant 0 : i32
    %c0_i32_0 = arith.constant 0 : i32
    %c0_i32_1 = arith.constant 0 : i32
    return %c0_i32, %c0_i32_0 : i32, i32
  }
  func.func @transform_7(%arg0: i32) -> (i32, i32) {
    %c0_i32 = arith.constant 0 : i32
    %c0_i32_0 = arith.constant 0 : i32
    %c0_i32_1 = arith.constant 0 : i32
    return %c0_i32, %c0_i32_0 : i32, i32
  }
  func.func @transform_8(%arg0: i32) -> (i32, i32) {
    %c0_i32 = arith.constant 0 : i32
    %c0_i32_0 = arith.constant 0 : i32
    %c0_i32_1 = arith.constant 0 : i32
    return %c0_i32, %c0_i32_0 : i32, i32
  }
  func.func @transform_9(%arg0: i32) -> (i32, i32) {
    %c0_i32 = arith.constant 0 : i32
    %c0_i32_0 = arith.constant 0 : i32
    return %arg0, %c0_i32 : i32, i32
  }
}

</mosaic_0001>

<bundles_post_ra>
// kernel: encoder_forward.1
= control target key start
LH: loop header
LB: loop body
LE: loop exit
PB: predicated region body
PF: predicated region fallthrough
CT: control target
= control target key end

     0   :  { %s2464_s1 = inlined_call_operand.vmem [shape: f32[256,512], index: 1, kind: input, shape index: {}]   ;;  %s2465_s0 = inlined_call_operand.vmem [shape: f32[64,256], index: 0, kind: input, shape index: {}]   ;;  %s2466_s3 = inlined_call_operand.vmem [shape: f32[512,256], index: 3, kind: input, shape index: {}]   ;;  %s2467_s5 = inlined_call_operand.vmem [shape: f32[256,128], index: 5, kind: input, shape index: {}]   ;;  %s2468_s2 = inlined_call_operand.vmem [shape: f32[1,512], index: 2, kind: input, shape index: {}]   ;;  %s2469_s7 = inlined_call_operand.vmem [shape: f32[128,128], index: 7, kind: input, shape index: {}]   ;;  %s2470_s4 = inlined_call_operand.vmem [shape: f32[1,256], index: 4, kind: input, shape index: {}]   ;;  %s2471_s6 = inlined_call_operand.vmem [shape: f32[1,128], index: 6, kind: input, shape index: {}]   ;;  %s2472_s8 = inlined_call_operand.vmem [shape: f32[1,128], index: 8, kind: input, shape index: {}]   ;;  %s2473_s9 = inlined_call_operand.vmem [shape: f32[64,128], index: 9, kind: output, shape index: {}]  }
   0x1   :  { %v109_v0 = vld [vmem:[%s2464_s1 + $0x1e8] sm:$0xff]  ;;  %v111_v1 = vld [vmem:[%s2464_s1 + $0x1f8] sm:$0xff]  ;;  %v108_v2 = vld [vmem:[%s2464_s1 + $0x1e0] sm:$0xff] }
   0x2   :  { %198 = vmatprep.subr.mxu0 %v109_v0  ;;  %311 = vmatprep.subr.mxu1 %v111_v1  ;;  %v110_v3 = vld [vmem:[%s2464_s1 + $0x1f0] sm:$0xff]  ;;  %v105_v4 = vld [vmem:[%s2464_s1 + $0x1c8] sm:$0xff]  ;;  %v107_v5 = vld [vmem:[%s2464_s1 + $0x1d8] sm:$0xff] }
   0x3   :  { %199 = vmatpush1.msra.mxu0 %v108_v2  ;;  %312 = vmatpush1.msra.mxu1 %v110_v3  ;;  %v104_v6 = vld [vmem:[%s2464_s1 + $0x1c0] sm:$0xff]  ;;  %v106_v7 = vld [vmem:[%s2464_s1 + $0x1d0] sm:$0xff]  ;;  %v101_v8 = vld [vmem:[%s2464_s1 + $0x1a8] sm:$0xff] }
   0x4   :  { %200 = vmatprep.subr.mxu0 %v105_v4  ;;  %313 = vmatprep.subr.mxu1 %v107_v5  ;;  %v103_v9 = vld [vmem:[%s2464_s1 + $0x1b8] sm:$0xff]  ;;  %v100_v10 = vld [vmem:[%s2464_s1 + $0x1a0] sm:$0xff]  ;;  %v102_v11 = vld [vmem:[%s2464_s1 + $0x1b0] sm:$0xff] }
   0x5   :  { %201 = vmatpush1.msra.mxu0 %v104_v6  ;;  %314 = vmatpush1.msra.mxu1 %v106_v7  ;;  %v97_v12 = vld [vmem:[%s2464_s1 + $0x188] sm:$0xff]  ;;  %v99_v13 = vld [vmem:[%s2464_s1 + $0x198] sm:$0xff]  ;;  %v96_v14 = vld [vmem:[%s2464_s1 + $0x180] sm:$0xff] }
   0x6   :  { %202 = vmatprep.subr.mxu0 %v101_v8  ;;  %315 = vmatprep.subr.mxu1 %v103_v9  ;;  %v98_v15 = vld [vmem:[%s2464_s1 + $0x190] sm:$0xff]  ;;  %v93_v16 = vld [vmem:[%s2464_s1 + $0x168] sm:$0xff]  ;;  %v95_v17 = vld [vmem:[%s2464_s1 + $0x178] sm:$0xff] }
   0x7   :  { %203 = vmatpush1.msra.mxu0 %v100_v10  ;;  %316 = vmatpush1.msra.mxu1 %v102_v11  ;;  %v92_v18 = vld [vmem:[%s2464_s1 + $0x160] sm:$0xff]  ;;  %v94_v19 = vld [vmem:[%s2464_s1 + $0x170] sm:$0xff]  ;;  %v89_v20 = vld [vmem:[%s2464_s1 + $0x148] sm:$0xff] }
   0x8   :  { %204 = vmatprep.subr.mxu0 %v97_v12  ;;  %317 = vmatprep.subr.mxu1 %v99_v13  ;;  %v91_v21 = vld [vmem:[%s2464_s1 + $0x158] sm:$0xff]  ;;  %v88_v22 = vld [vmem:[%s2464_s1 + $0x140] sm:$0xff]  ;;  %v90_v23 = vld [vmem:[%s2464_s1 + $0x150] sm:$0xff] }
   0x9   :  { %205 = vmatpush1.msra.mxu0 %v96_v14  ;;  %318 = vmatpush1.msra.mxu1 %v98_v15  ;;  %v85_v24 = vld [vmem:[%s2464_s1 + $0x128] sm:$0xff]  ;;  %v87_v25 = vld [vmem:[%s2464_s1 + $0x138] sm:$0xff]  ;;  %v84_v26 = vld [vmem:[%s2464_s1 + $0x120] sm:$0xff] }
   0xa   :  { %206 = vmatprep.subr.mxu0 %v93_v16  ;;  %319 = vmatprep.subr.mxu1 %v95_v17  ;;  %v86_v27 = vld [vmem:[%s2464_s1 + $0x130] sm:$0xff]  ;;  %v81_v28 = vld [vmem:[%s2464_s1 + $0x108] sm:$0xff]  ;;  %v83_v29 = vld [vmem:[%s2464_s1 + $0x118] sm:$0xff] }
   0xb   :  { %207 = vmatpush1.msra.mxu0 %v92_v18  ;;  %320 = vmatpush1.msra.mxu1 %v94_v19  ;;  %v80_v30 = vld [vmem:[%s2464_s1 + $0x100] sm:$0xff]  ;;  %v82_v31 = vld [vmem:[%s2464_s1 + $0x110] sm:$0xff]  ;;  %v77_v32 = vld [vmem:[%s2464_s1 + $0xe8] sm:$0xff] }
   0xc   :  { %208 = vmatprep.subr.mxu0 %v89_v20  ;;  %321 = vmatprep.subr.mxu1 %v91_v21  ;;  %v79_v33 = vld [vmem:[%s2464_s1 + $0xf8] sm:$0xff]  ;;  %v76_v34 = vld [vmem:[%s2464_s1 + $0xe0] sm:$0xff]  ;;  %v78_v35 = vld [vmem:[%s2464_s1 + $0xf0] sm:$0xff] }
   0xd   :  { %209 = vmatpush1.msra.mxu0 %v88_v22  ;;  %322 = vmatpush1.msra.mxu1 %v90_v23  ;;  %v73_v36 = vld [vmem:[%s2464_s1 + $0xc8] sm:$0xff]  ;;  %v75_v37 = vld [vmem:[%s2464_s1 + $0xd8] sm:$0xff]  ;;  %v72_v38 = vld [vmem:[%s2464_s1 + $0xc0] sm:$0xff] }
   0xe   :  { %210 = vmatprep.subr.mxu0 %v85_v24  ;;  %323 = vmatprep.subr.mxu1 %v87_v25  ;;  %v74_v39 = vld [vmem:[%s2464_s1 + $0xd0] sm:$0xff]  ;;  %v69_v40 = vld [vmem:[%s2464_s1 + $0xa8] sm:$0xff]  ;;  %v71_v41 = vld [vmem:[%s2464_s1 + $0xb8] sm:$0xff] }
   0xf   :  { %211 = vmatpush1.msra.mxu0 %v84_v26  ;;  %324 = vmatpush1.msra.mxu1 %v86_v27  ;;  %v68_v42 = vld [vmem:[%s2464_s1 + $0xa0] sm:$0xff]  ;;  %v70_v43 = vld [vmem:[%s2464_s1 + $0xb0] sm:$0xff]  ;;  %v65_v44 = vld [vmem:[%s2464_s1 + $0x88] sm:$0xff] }
  0x10   :  { %212 = vmatprep.subr.mxu0 %v81_v28  ;;  %325 = vmatprep.subr.mxu1 %v83_v29  ;;  %v67_v45 = vld [vmem:[%s2464_s1 + $0x98] sm:$0xff]  ;;  %v64_v46 = vld [vmem:[%s2464_s1 + $0x80] sm:$0xff]  ;;  %v66_v47 = vld [vmem:[%s2464_s1 + $0x90] sm:$0xff] }
  0x11   :  { %213 = vmatpush1.msra.mxu0 %v80_v30  ;;  %326 = vmatpush1.msra.mxu1 %v82_v31  ;;  %v61_v48 = vld [vmem:[%s2464_s1 + $0x68] sm:$0xff]  ;;  %v63_v49 = vld [vmem:[%s2464_s1 + $0x78] sm:$0xff]  ;;  %v60_v50 = vld [vmem:[%s2464_s1 + $0x60] sm:$0xff] }
  0x12   :  { %214 = vmatprep.subr.mxu0 %v77_v32  ;;  %327 = vmatprep.subr.mxu1 %v79_v33  ;;  %v62_v51 = vld [vmem:[%s2464_s1 + $0x70] sm:$0xff]  ;;  %v57_v52 = vld [vmem:[%s2464_s1 + $0x48] sm:$0xff]  ;;  %v59_v53 = vld [vmem:[%s2464_s1 + $0x58] sm:$0xff] }
  0x13   :  { %215 = vmatpush1.msra.mxu0 %v76_v34  ;;  %328 = vmatpush1.msra.mxu1 %v78_v35  ;;  %v56_v54 = vld [vmem:[%s2464_s1 + $0x40] sm:$0xff]  ;;  %v58_v55 = vld [vmem:[%s2464_s1 + $0x50] sm:$0xff]  ;;  %v53_v56 = vld [vmem:[%s2464_s1 + $0x28] sm:$0xff] }
  0x14   :  { %216 = vmatprep.subr.mxu0 %v73_v36  ;;  %329 = vmatprep.subr.mxu1 %v75_v37  ;;  %v55_v57 = vld [vmem:[%s2464_s1 + $0x38] sm:$0xff]  ;;  %v52_v58 = vld [vmem:[%s2464_s1 + $0x20] sm:$0xff]  ;;  %v54_v59 = vld [vmem:[%s2464_s1 + $0x30] sm:$0xff] }
  0x15   :  { %217 = vmatpush1.msra.mxu0 %v72_v38  ;;  %330 = vmatpush1.msra.mxu1 %v74_v39  ;;  %v49_v60 = vld [vmem:[%s2464_s1 + $0x8] sm:$0xff]  ;;  %v51_v61 = vld [vmem:[%s2464_s1 + $0x18] sm:$0xff]  ;;  %v48_v62 = vld [vmem:[%s2464_s1] sm:$0xff] }
  0x16   :  { %218 = vmatprep.subr.mxu0 %v69_v40  ;;  %331 = vmatprep.subr.mxu1 %v71_v41  ;;  %v50_v63 = vld [vmem:[%s2464_s1 + $0x10] sm:$0xff]  ;;  %v173_v0 = vld [vmem:[%s2464_s1 + $0x3e8] sm:$0xff]  ;;  %v175_v1 = vld [vmem:[%s2464_s1 + $0x3f8] sm:$0xff] }
  0x17   :  { %219 = vmatpush1.msra.mxu0 %v68_v42  ;;  %332 = vmatpush1.msra.mxu1 %v70_v43  ;;  %v172_v2 = vld [vmem:[%s2464_s1 + $0x3e0] sm:$0xff]  ;;  %v174_v3 = vld [vmem:[%s2464_s1 + $0x3f0] sm:$0xff]  ;;  %v169_v4 = vld [vmem:[%s2464_s1 + $0x3c8] sm:$0xff] }
  0x18   :  { %220 = vmatprep.subr.mxu0 %v65_v44  ;;  %333 = vmatprep.subr.mxu1 %v67_v45  ;;  %v171_v5 = vld [vmem:[%s2464_s1 + $0x3d8] sm:$0xff]  ;;  %v168_v6 = vld [vmem:[%s2464_s1 + $0x3c0] sm:$0xff]  ;;  %v170_v7 = vld [vmem:[%s2464_s1 + $0x3d0] sm:$0xff] }
  0x19   :  { %221 = vmatpush1.msra.mxu0 %v64_v46  ;;  %334 = vmatpush1.msra.mxu1 %v66_v47  ;;  %v165_v8 = vld [vmem:[%s2464_s1 + $0x3a8] sm:$0xff]  ;;  %v167_v9 = vld [vmem:[%s2464_s1 + $0x3b8] sm:$0xff]  ;;  %v164_v10 = vld [vmem:[%s2464_s1 + $0x3a0] sm:$0xff] }
  0x1a   :  { %222 = vmatprep.subr.mxu0 %v61_v48  ;;  %335 = vmatprep.subr.mxu1 %v63_v49  ;;  %v166_v11 = vld [vmem:[%s2464_s1 + $0x3b0] sm:$0xff]  ;;  %v161_v12 = vld [vmem:[%s2464_s1 + $0x388] sm:$0xff]  ;;  %v163_v13 = vld [vmem:[%s2464_s1 + $0x398] sm:$0xff] }
  0x1b   :  { %223 = vmatpush1.msra.mxu0 %v60_v50  ;;  %336 = vmatpush1.msra.mxu1 %v62_v51  ;;  %v160_v14 = vld [vmem:[%s2464_s1 + $0x380] sm:$0xff]  ;;  %v162_v15 = vld [vmem:[%s2464_s1 + $0x390] sm:$0xff]  ;;  %v157_v16 = vld [vmem:[%s2464_s1 + $0x368] sm:$0xff] }
  0x1c   :  { %224 = vmatprep.subr.mxu0 %v57_v52  ;;  %337 = vmatprep.subr.mxu1 %v59_v53  ;;  %v159_v17 = vld [vmem:[%s2464_s1 + $0x378] sm:$0xff]  ;;  %v156_v18 = vld [vmem:[%s2464_s1 + $0x360] sm:$0xff]  ;;  %v158_v19 = vld [vmem:[%s2464_s1 + $0x370] sm:$0xff] }
  0x1d   :  { %225 = vmatpush1.msra.mxu0 %v56_v54  ;;  %338 = vmatpush1.msra.mxu1 %v58_v55  ;;  %v153_v20 = vld [vmem:[%s2464_s1 + $0x348] sm:$0xff]  ;;  %v155_v21 = vld [vmem:[%s2464_s1 + $0x358] sm:$0xff]  ;;  %v152_v22 = vld [vmem:[%s2464_s1 + $0x340] sm:$0xff] }
  0x1e   :  { %226 = vmatprep.subr.mxu0 %v53_v56  ;;  %339 = vmatprep.subr.mxu1 %v55_v57  ;;  %v154_v23 = vld [vmem:[%s2464_s1 + $0x350] sm:$0xff]  ;;  %v149_v24 = vld [vmem:[%s2464_s1 + $0x328] sm:$0xff]  ;;  %v151_v25 = vld [vmem:[%s2464_s1 + $0x338] sm:$0xff] }
  0x1f   :  { %227 = vmatpush1.msra.mxu0 %v52_v58  ;;  %340 = vmatpush1.msra.mxu1 %v54_v59  ;;  %v148_v26 = vld [vmem:[%s2464_s1 + $0x320] sm:$0xff]  ;;  %v150_v27 = vld [vmem:[%s2464_s1 + $0x330] sm:$0xff]  ;;  %v145_v28 = vld [vmem:[%s2464_s1 + $0x308] sm:$0xff] }
  0x20   :  { %228 = vmatprep.subr.mxu0 %v49_v60  ;;  %341 = vmatprep.subr.mxu1 %v51_v61  ;;  %v147_v29 = vld [vmem:[%s2464_s1 + $0x318] sm:$0xff]  ;;  %v144_v30 = vld [vmem:[%s2464_s1 + $0x300] sm:$0xff]  ;;  %v146_v31 = vld [vmem:[%s2464_s1 + $0x310] sm:$0xff] }
  0x21   :  { %229 = vmatpush1.msra.mxu0 %v48_v62  ;;  %342 = vmatpush1.msra.mxu1 %v50_v63  ;;  %v141_v32 = vld [vmem:[%s2464_s1 + $0x2e8] sm:$0xff]  ;;  %v143_v33 = vld [vmem:[%s2464_s1 + $0x2f8] sm:$0xff]  ;;  %v140_v34 = vld [vmem:[%s2464_s1 + $0x2e0] sm:$0xff] }
  0x22   :  { %230 = vmatprep.subr.mxu0 %v173_v0  ;;  %343 = vmatprep.subr.mxu1 %v175_v1  ;;  %v142_v35 = vld [vmem:[%s2464_s1 + $0x2f0] sm:$0xff]  ;;  %v137_v36 = vld [vmem:[%s2464_s1 + $0x2c8] sm:$0xff]  ;;  %v139_v37 = vld [vmem:[%s2464_s1 + $0x2d8] sm:$0xff] }
  0x23   :  { %231 = vmatpush2.msra.mxu0 %v172_v2  ;;  %344 = vmatpush2.msra.mxu1 %v174_v3  ;;  %v136_v38 = vld [vmem:[%s2464_s1 + $0x2c0] sm:$0xff]  ;;  %v138_v39 = vld [vmem:[%s2464_s1 + $0x2d0] sm:$0xff]  ;;  %v133_v40 = vld [vmem:[%s2464_s1 + $0x2a8] sm:$0xff] }
  0x24   :  { %232 = vmatprep.subr.mxu0 %v169_v4  ;;  %345 = vmatprep.subr.mxu1 %v171_v5  ;;  %v135_v41 = vld [vmem:[%s2464_s1 + $0x2b8] sm:$0xff]  ;;  %v132_v42 = vld [vmem:[%s2464_s1 + $0x2a0] sm:$0xff]  ;;  %v134_v43 = vld [vmem:[%s2464_s1 + $0x2b0] sm:$0xff] }
  0x25   :  { %233 = vmatpush2.msra.mxu0 %v168_v6  ;;  %346 = vmatpush2.msra.mxu1 %v170_v7  ;;  %v129_v44 = vld [vmem:[%s2464_s1 + $0x288] sm:$0xff]  ;;  %v131_v45 = vld [vmem:[%s2464_s1 + $0x298] sm:$0xff]  ;;  %v128_v46 = vld [vmem:[%s2464_s1 + $0x280] sm:$0xff] }
  0x26   :  { %234 = vmatprep.subr.mxu0 %v165_v8  ;;  %347 = vmatprep.subr.mxu1 %v167_v9  ;;  %v130_v47 = vld [vmem:[%s2464_s1 + $0x290] sm:$0xff]  ;;  %v125_v48 = vld [vmem:[%s2464_s1 + $0x268] sm:$0xff]  ;;  %v127_v49 = vld [vmem:[%s2464_s1 + $0x278] sm:$0xff] }
  0x27   :  { %235 = vmatpush2.msra.mxu0 %v164_v10  ;;  %348 = vmatpush2.msra.mxu1 %v166_v11  ;;  %v124_v50 = vld [vmem:[%s2464_s1 + $0x260] sm:$0xff]  ;;  %v126_v51 = vld [vmem:[%s2464_s1 + $0x270] sm:$0xff]  ;;  %v121_v52 = vld [vmem:[%s2464_s1 + $0x248] sm:$0xff] }
  0x28   :  { %236 = vmatprep.subr.mxu0 %v161_v12  ;;  %349 = vmatprep.subr.mxu1 %v163_v13  ;;  %v123_v53 = vld [vmem:[%s2464_s1 + $0x258] sm:$0xff]  ;;  %v120_v54 = vld [vmem:[%s2464_s1 + $0x240] sm:$0xff]  ;;  %v122_v55 = vld [vmem:[%s2464_s1 + $0x250] sm:$0xff] }
  0x29   :  { %237 = vmatpush2.msra.mxu0 %v160_v14  ;;  %350 = vmatpush2.msra.mxu1 %v162_v15  ;;  %v117_v56 = vld [vmem:[%s2464_s1 + $0x228] sm:$0xff]  ;;  %v119_v57 = vld [vmem:[%s2464_s1 + $0x238] sm:$0xff]  ;;  %v116_v58 = vld [vmem:[%s2464_s1 + $0x220] sm:$0xff] }
  0x2a   :  { %238 = vmatprep.subr.mxu0 %v157_v16  ;;  %351 = vmatprep.subr.mxu1 %v159_v17  ;;  %v118_v59 = vld [vmem:[%s2464_s1 + $0x230] sm:$0xff]  ;;  %v113_v60 = vld [vmem:[%s2464_s1 + $0x208] sm:$0xff]  ;;  %v115_v61 = vld [vmem:[%s2464_s1 + $0x218] sm:$0xff] }
  0x2b   :  { %239 = vmatpush2.msra.mxu0 %v156_v18  ;;  %352 = vmatpush2.msra.mxu1 %v158_v19  ;;  %v112_v62 = vld [vmem:[%s2464_s1 + $0x200] sm:$0xff]  ;;  %v33_v63 = vld [vmem:[%s2465_s0 + $0x8] sm:$0xff]  ;;  %v114_v0 = vld [vmem:[%s2464_s1 + $0x210] sm:$0xff] }
  0x2c   :  { %240 = vmatprep.subr.mxu0 %v153_v20  ;;  %353 = vmatprep.subr.mxu1 %v155_v21  ;;  %v32_v1 = vld [vmem:[%s2465_s0] sm:$0xff]  ;;  %v35_v2 = vld [vmem:[%s2465_s0 + $0x18] sm:$0xff]  ;;  %v486_v5 = vld [vmem:[%s2466_s3 + $0xf0] sm:$0xff] }
  0x2d   :  { %241 = vmatpush2.msra.mxu0 %v152_v22  ;;  %354 = vmatpush2.msra.mxu1 %v154_v23  ;;  %v487_v3 = vld [vmem:[%s2466_s3 + $0xf8] sm:$0xff]  ;;  %v550_v6 = vld [vmem:[%s2466_s3 + $0x2f0] sm:$0xff]  ;;  %v37_v8 = vld [vmem:[%s2465_s0 + $0x28] sm:$0xff] }
  0x2e   :  { %242 = vmatprep.subr.mxu0 %v149_v24  ;;  %355 = vmatprep.subr.mxu1 %v151_v25  ;;  %v551_v4 = vld [vmem:[%s2466_s3 + $0x2f8] sm:$0xff]  ;;  %v34_v7 = vld [vmem:[%s2465_s0 + $0x10] sm:$0xff]  ;;  %v485_v9 = vld [vmem:[%s2466_s3 + $0xe8] sm:$0xff] }
  0x2f   :  { %243 = vmatpush2.msra.mxu0 %v148_v26  ;;  %356 = vmatpush2.msra.mxu1 %v150_v27  ;;  %v549_v10 = vld [vmem:[%s2466_s3 + $0x2e8] sm:$0xff]  ;;  %v484_v11 = vld [vmem:[%s2466_s3 + $0xe0] sm:$0xff]  ;;  %v39_v14 = vld [vmem:[%s2465_s0 + $0x38] sm:$0xff] }
  0x30   :  { %244 = vmatprep.subr.mxu0 %v145_v28  ;;  %357 = vmatprep.subr.mxu1 %v147_v29  ;;  %v548_v12 = vld [vmem:[%s2466_s3 + $0x2e0] sm:$0xff]  ;;  %v483_v15 = vld [vmem:[%s2466_s3 + $0xd8] sm:$0xff]  ;;  %v482_v17 = vld [vmem:[%s2466_s3 + $0xd0] sm:$0xff] }
  0x31   :  { %245 = vmatpush2.msra.mxu0 %v144_v30  ;;  %358 = vmatpush2.msra.mxu1 %v146_v31  ;;  %v36_v13 = vld [vmem:[%s2465_s0 + $0x20] sm:$0xff]  ;;  %v547_v16 = vld [vmem:[%s2466_s3 + $0x2d8] sm:$0xff]  ;;  %v546_v18 = vld [vmem:[%s2466_s3 + $0x2d0] sm:$0xff] }
  0x32   :  { %246 = vmatprep.subr.mxu0 %v141_v32  ;;  %359 = vmatprep.subr.mxu1 %v143_v33  ;;  %v38_v19 = vld [vmem:[%s2465_s0 + $0x30] sm:$0xff]  ;;  %v41_v20 = vld [vmem:[%s2465_s0 + $0x48] sm:$0xff]  ;;  %v480_v23 = vld [vmem:[%s2466_s3 + $0xc0] sm:$0xff] }
  0x33   :  { %247 = vmatpush2.msra.mxu0 %v140_v34  ;;  %360 = vmatpush2.msra.mxu1 %v142_v35  ;;  %v481_v21 = vld [vmem:[%s2466_s3 + $0xc8] sm:$0xff]  ;;  %v544_v24 = vld [vmem:[%s2466_s3 + $0x2c0] sm:$0xff]  ;;  %v43_v26 = vld [vmem:[%s2465_s0 + $0x58] sm:$0xff] }
  0x34   :  { %248 = vmatprep.subr.mxu0 %v137_v36  ;;  %361 = vmatprep.subr.mxu1 %v139_v37  ;;  %v545_v22 = vld [vmem:[%s2466_s3 + $0x2c8] sm:$0xff]  ;;  %v40_v25 = vld [vmem:[%s2465_s0 + $0x40] sm:$0xff]  ;;  %v479_v27 = vld [vmem:[%s2466_s3 + $0xb8] sm:$0xff] }
  0x35   :  { %249 = vmatpush2.msra.mxu0 %v136_v38  ;;  %362 = vmatpush2.msra.mxu1 %v138_v39  ;;  %v543_v28 = vld [vmem:[%s2466_s3 + $0x2b8] sm:$0xff]  ;;  %v478_v29 = vld [vmem:[%s2466_s3 + $0xb0] sm:$0xff]  ;;  %v45_v32 = vld [vmem:[%s2465_s0 + $0x68] sm:$0xff] }
  0x36   :  { %250 = vmatprep.subr.mxu0 %v133_v40  ;;  %363 = vmatprep.subr.mxu1 %v135_v41  ;;  %v542_v30 = vld [vmem:[%s2466_s3 + $0x2b0] sm:$0xff]  ;;  %v477_v33 = vld [vmem:[%s2466_s3 + $0xa8] sm:$0xff]  ;;  %v476_v35 = vld [vmem:[%s2466_s3 + $0xa0] sm:$0xff] }
  0x37   :  { %251 = vmatpush2.msra.mxu0 %v132_v42  ;;  %364 = vmatpush2.msra.mxu1 %v134_v43  ;;  %v42_v31 = vld [vmem:[%s2465_s0 + $0x50] sm:$0xff]  ;;  %v541_v34 = vld [vmem:[%s2466_s3 + $0x2a8] sm:$0xff]  ;;  %v540_v36 = vld [vmem:[%s2466_s3 + $0x2a0] sm:$0xff] }
  0x38   :  { %252 = vmatprep.subr.mxu0 %v129_v44  ;;  %365 = vmatprep.subr.mxu1 %v131_v45  ;;  %v44_v37 = vld [vmem:[%s2465_s0 + $0x60] sm:$0xff]  ;;  %v47_v38 = vld [vmem:[%s2465_s0 + $0x78] sm:$0xff]  ;;  %v474_v41 = vld [vmem:[%s2466_s3 + $0x90] sm:$0xff] }
  0x39   :  { %253 = vmatpush2.msra.mxu0 %v128_v46  ;;  %366 = vmatpush2.msra.mxu1 %v130_v47  ;;  %v475_v39 = vld [vmem:[%s2466_s3 + $0x98] sm:$0xff]  ;;  %v538_v42 = vld [vmem:[%s2466_s3 + $0x290] sm:$0xff]  ;;  %v473_v44 = vld [vmem:[%s2466_s3 + $0x88] sm:$0xff] }
  0x3a   :  { %254 = vmatprep.subr.mxu0 %v125_v48  ;;  %367 = vmatprep.subr.mxu1 %v127_v49  ;;  %v539_v40 = vld [vmem:[%s2466_s3 + $0x298] sm:$0xff]  ;;  %v46_v43 = vld [vmem:[%s2465_s0 + $0x70] sm:$0xff]  ;;  %v537_v45 = vld [vmem:[%s2466_s3 + $0x288] sm:$0xff] }
  0x3b   :  { %255 = vmatpush2.msra.mxu0 %v124_v50  ;;  %368 = vmatpush2.msra.mxu1 %v126_v51  ;;  %v472_v46 = vld [vmem:[%s2466_s3 + $0x80] sm:$0xff]  ;;  %v471_v48 = vld [vmem:[%s2466_s3 + $0x78] sm:$0xff]  ;;  %v470_v50 = vld [vmem:[%s2466_s3 + $0x70] sm:$0xff] }
  0x3c   :  { %256 = vmatprep.subr.mxu0 %v121_v52  ;;  %369 = vmatprep.subr.mxu1 %v123_v53  ;;  %v536_v47 = vld [vmem:[%s2466_s3 + $0x280] sm:$0xff]  ;;  %v535_v49 = vld [vmem:[%s2466_s3 + $0x278] sm:$0xff]  ;;  %v534_v51 = vld [vmem:[%s2466_s3 + $0x270] sm:$0xff] }
  0x3d   :  { %257 = vmatpush2.msra.mxu0 %v120_v54  ;;  %370 = vmatpush2.msra.mxu1 %v122_v55  ;;  %v469_v52 = vld [vmem:[%s2466_s3 + $0x68] sm:$0xff]  ;;  %v468_v54 = vld [vmem:[%s2466_s3 + $0x60] sm:$0xff] }
  0x3e   :  { %258 = vmatprep.subr.mxu0 %v117_v56  ;;  %371 = vmatprep.subr.mxu1 %v119_v57  ;;  %v533_v53 = vld [vmem:[%s2466_s3 + $0x268] sm:$0xff]  ;;  %v532_v55 = vld [vmem:[%s2466_s3 + $0x260] sm:$0xff]  ;;  %v467_v56 = vld [vmem:[%s2466_s3 + $0x58] sm:$0xff] }
  0x3f   :  { %259 = vmatpush2.msra.mxu0 %v116_v58  ;;  %372 = vmatpush2.msra.mxu1 %v118_v59  ;;  %v531_v57 = vld [vmem:[%s2466_s3 + $0x258] sm:$0xff]  ;;  %v466_v58 = vld [vmem:[%s2466_s3 + $0x50] sm:$0xff] }
  0x40   :  { %260 = vmatprep.subr.mxu0 %v113_v60  ;;  %373 = vmatprep.subr.mxu1 %v115_v61  ;;  %v530_v59 = vld [vmem:[%s2466_s3 + $0x250] sm:$0xff]  ;;  %v465_v60 = vld [vmem:[%s2466_s3 + $0x48] sm:$0xff] }
  0x41   :  { %261 = vmatpush2.msra.mxu0 %v112_v62  ;;  %262 = vmatprep.mubr.f32.mxu0 %v33_v63  ;;  %v529_v61 = vld [vmem:[%s2466_s3 + $0x248] sm:$0xff]  ;;  %v464_v62 = vld [vmem:[%s2466_s3 + $0x40] sm:$0xff] }
  0x42   :  { %374 = vmatpush2.msra.mxu1 %v114_v0  ;;  %375 = vmatprep.mubr.f32.mxu1 %v33_v63  ;;  %v528_v63 = vld [vmem:[%s2466_s3 + $0x240] sm:$0xff]  ;;  %v463_v0 = vld [vmem:[%s2466_s3 + $0x38] sm:$0xff] }
  0x43   :  { %263 = vmatmul.mubr.f32.vlgmr.msra.gmra.mxu0 %v32_v1  ;;  %376 = vmatmul.mubr.f32.vlgmr.msra.gmra.mxu1 %v32_v1  ;;  %v527_v1 = vld [vmem:[%s2466_s3 + $0x238] sm:$0xff] }
  0x44   :  { %268 = vmatprep.mubr.f32.mxu0 %v35_v2  ;;  %381 = vmatprep.mubr.f32.mxu1 %v35_v2  ;;  %v462_v2 = vld [vmem:[%s2466_s3 + $0x30] sm:$0xff] }
  0x45   :  { %596 = vmatprep.subr.mxu0 %v487_v3  ;;  %709 = vmatprep.subr.mxu1 %v551_v4  ;;  %v526_v3 = vld [vmem:[%s2466_s3 + $0x230] sm:$0xff]  ;;  %v461_v4 = vld [vmem:[%s2466_s3 + $0x28] sm:$0xff] }
  0x46   :  { %597 = vmatpush1.msra.mxu0 %v486_v5  ;;  %710 = vmatpush1.msra.mxu1 %v550_v6  ;;  %v525_v5 = vld [vmem:[%s2466_s3 + $0x228] sm:$0xff]  ;;  %v460_v6 = vld [vmem:[%s2466_s3 + $0x20] sm:$0xff] }
  0x47   :  { %269 = vmatmul.mubr.f32.gmra.mxu0 %v34_v7  ;;  %382 = vmatmul.mubr.f32.gmra.mxu1 %v34_v7  ;;  %v524_v7 = vld [vmem:[%s2466_s3 + $0x220] sm:$0xff] }
  0x48   :  { %274 = vmatprep.mubr.f32.mxu0 %v37_v8  ;;  %387 = vmatprep.mubr.f32.mxu1 %v37_v8  ;;  %v459_v8 = vld [vmem:[%s2466_s3 + $0x18] sm:$0xff] }
  0x49   :  { %598 = vmatprep.subr.mxu0 %v485_v9  ;;  %711 = vmatprep.subr.mxu1 %v549_v10  ;;  %v523_v9 = vld [vmem:[%s2466_s3 + $0x218] sm:$0xff]  ;;  %v458_v10 = vld [vmem:[%s2466_s3 + $0x10] sm:$0xff] }
  0x4a   :  { %599 = vmatpush1.msra.mxu0 %v484_v11  ;;  %712 = vmatpush1.msra.mxu1 %v548_v12  ;;  %v522_v11 = vld [vmem:[%s2466_s3 + $0x210] sm:$0xff]  ;;  %v457_v12 = vld [vmem:[%s2466_s3 + $0x8] sm:$0xff] }
  0x4b   :  { %275 = vmatmul.mubr.f32.gmra.mxu0 %v36_v13  ;;  %388 = vmatmul.mubr.f32.gmra.mxu1 %v36_v13  ;;  %v521_v13 = vld [vmem:[%s2466_s3 + $0x208] sm:$0xff] }
  0x4c   :  { %280 = vmatprep.mubr.f32.mxu0 %v39_v14  ;;  %393 = vmatprep.mubr.f32.mxu1 %v39_v14  ;;  %v456_v14 = vld [vmem:[%s2466_s3] sm:$0xff] }
  0x4d   :  { %600 = vmatprep.subr.mxu0 %v483_v15  ;;  %713 = vmatprep.subr.mxu1 %v547_v16  ;;  %v520_v15 = vld [vmem:[%s2466_s3 + $0x200] sm:$0xff]  ;;  %v519_v16 = vld [vmem:[%s2466_s3 + $0x1f8] sm:$0xff] }
  0x4e   :  { %601 = vmatpush1.msra.mxu0 %v482_v17  ;;  %714 = vmatpush1.msra.mxu1 %v546_v18  ;;  %v583_v17 = vld [vmem:[%s2466_s3 + $0x3f8] sm:$0xff]  ;;  %v518_v18 = vld [vmem:[%s2466_s3 + $0x1f0] sm:$0xff] }
  0x4f   :  { %281 = vmatmul.mubr.f32.gmra.mxu0 %v38_v19  ;;  %394 = vmatmul.mubr.f32.gmra.mxu1 %v38_v19  ;;  %v582_v19 = vld [vmem:[%s2466_s3 + $0x3f0] sm:$0xff] }
  0x50   :  { %286 = vmatprep.mubr.f32.mxu0 %v41_v20  ;;  %399 = vmatprep.mubr.f32.mxu1 %v41_v20  ;;  %v517_v20 = vld [vmem:[%s2466_s3 + $0x1e8] sm:$0xff] }
  0x51   :  { %602 = vmatprep.subr.mxu0 %v481_v21  ;;  %715 = vmatprep.subr.mxu1 %v545_v22  ;;  %v581_v21 = vld [vmem:[%s2466_s3 + $0x3e8] sm:$0xff]  ;;  %v516_v22 = vld [vmem:[%s2466_s3 + $0x1e0] sm:$0xff] }
  0x52   :  { %603 = vmatpush1.msra.mxu0 %v480_v23  ;;  %716 = vmatpush1.msra.mxu1 %v544_v24  ;;  %v580_v23 = vld [vmem:[%s2466_s3 + $0x3e0] sm:$0xff]  ;;  %v515_v24 = vld [vmem:[%s2466_s3 + $0x1d8] sm:$0xff] }
  0x53   :  { %287 = vmatmul.mubr.f32.gmra.mxu0 %v40_v25  ;;  %400 = vmatmul.mubr.f32.gmra.mxu1 %v40_v25  ;;  %v579_v25 = vld [vmem:[%s2466_s3 + $0x3d8] sm:$0xff] }
  0x54   :  { %292 = vmatprep.mubr.f32.mxu0 %v43_v26  ;;  %405 = vmatprep.mubr.f32.mxu1 %v43_v26  ;;  %v514_v26 = vld [vmem:[%s2466_s3 + $0x1d0] sm:$0xff] }
  0x55   :  { %604 = vmatprep.subr.mxu0 %v479_v27  ;;  %717 = vmatprep.subr.mxu1 %v543_v28  ;;  %v578_v27 = vld [vmem:[%s2466_s3 + $0x3d0] sm:$0xff]  ;;  %v513_v28 = vld [vmem:[%s2466_s3 + $0x1c8] sm:$0xff] }
  0x56   :  { %605 = vmatpush1.msra.mxu0 %v478_v29  ;;  %718 = vmatpush1.msra.mxu1 %v542_v30  ;;  %v577_v29 = vld [vmem:[%s2466_s3 + $0x3c8] sm:$0xff]  ;;  %v512_v30 = vld [vmem:[%s2466_s3 + $0x1c0] sm:$0xff] }
  0x57   :  { %293 = vmatmul.mubr.f32.gmra.mxu0 %v42_v31  ;;  %406 = vmatmul.mubr.f32.gmra.mxu1 %v42_v31  ;;  %v576_v31 = vld [vmem:[%s2466_s3 + $0x3c0] sm:$0xff] }
  0x58   :  { %298 = vmatprep.mubr.f32.mxu0 %v45_v32  ;;  %411 = vmatprep.mubr.f32.mxu1 %v45_v32  ;;  %v511_v32 = vld [vmem:[%s2466_s3 + $0x1b8] sm:$0xff] }
  0x59   :  { %606 = vmatprep.subr.mxu0 %v477_v33  ;;  %719 = vmatprep.subr.mxu1 %v541_v34  ;;  %v575_v33 = vld [vmem:[%s2466_s3 + $0x3b8] sm:$0xff]  ;;  %v510_v34 = vld [vmem:[%s2466_s3 + $0x1b0] sm:$0xff] }
  0x5a   :  { %607 = vmatpush1.msra.mxu0 %v476_v35  ;;  %720 = vmatpush1.msra.mxu1 %v540_v36  ;;  %v574_v35 = vld [vmem:[%s2466_s3 + $0x3b0] sm:$0xff]  ;;  %v509_v36 = vld [vmem:[%s2466_s3 + $0x1a8] sm:$0xff] }
  0x5b   :  { %299 = vmatmul.mubr.f32.gmra.mxu0 %v44_v37  ;;  %412 = vmatmul.mubr.f32.gmra.mxu1 %v44_v37  ;;  %v573_v37 = vld [vmem:[%s2466_s3 + $0x3a8] sm:$0xff] }
  0x5c   :  { %304 = vmatprep.mubr.f32.mxu0 %v47_v38  ;;  %417 = vmatprep.mubr.f32.mxu1 %v47_v38  ;;  %v508_v38 = vld [vmem:[%s2466_s3 + $0x1a0] sm:$0xff] }
  0x5d   :  { %608 = vmatprep.subr.mxu0 %v475_v39  ;;  %721 = vmatprep.subr.mxu1 %v539_v40  ;;  %v572_v39 = vld [vmem:[%s2466_s3 + $0x3a0] sm:$0xff]  ;;  %v507_v40 = vld [vmem:[%s2466_s3 + $0x198] sm:$0xff] }
  0x5e   :  { %609 = vmatpush1.msra.mxu0 %v474_v41  ;;  %722 = vmatpush1.msra.mxu1 %v538_v42  ;;  %v571_v41 = vld [vmem:[%s2466_s3 + $0x398] sm:$0xff]  ;;  %v506_v42 = vld [vmem:[%s2466_s3 + $0x190] sm:$0xff] }
  0x5f   :  { %305 = vmatmul.mubr.f32.gmra.mxu0 %v46_v43  ;;  %418 = vmatmul.mubr.f32.gmra.mxu1 %v46_v43  ;;  %v570_v43 = vld [vmem:[%s2466_s3 + $0x390] sm:$0xff] }
  0x60   :  { %610 = vmatprep.subr.mxu0 %v473_v44  ;;  %723 = vmatprep.subr.mxu1 %v537_v45  ;;  %v505_v44 = vld [vmem:[%s2466_s3 + $0x188] sm:$0xff] }
  0x61   :  { %611 = vmatpush1.msra.mxu0 %v472_v46  ;;  %724 = vmatpush1.msra.mxu1 %v536_v47  ;;  %v569_v45 = vld [vmem:[%s2466_s3 + $0x388] sm:$0xff]  ;;  %v504_v46 = vld [vmem:[%s2466_s3 + $0x180] sm:$0xff] }
  0x62   :  { %612 = vmatprep.subr.mxu0 %v471_v48  ;;  %725 = vmatprep.subr.mxu1 %v535_v49  ;;  %v568_v47 = vld [vmem:[%s2466_s3 + $0x380] sm:$0xff]  ;;  %v503_v48 = vld [vmem:[%s2466_s3 + $0x178] sm:$0xff] }
  0x63   :  { %613 = vmatpush1.msra.mxu0 %v470_v50  ;;  %726 = vmatpush1.msra.mxu1 %v534_v51  ;;  %v567_v49 = vld [vmem:[%s2466_s3 + $0x378] sm:$0xff]  ;;  %v502_v50 = vld [vmem:[%s2466_s3 + $0x170] sm:$0xff] }
  0x64   :  { %614 = vmatprep.subr.mxu0 %v469_v52  ;;  %727 = vmatprep.subr.mxu1 %v533_v53  ;;  %v566_v51 = vld [vmem:[%s2466_s3 + $0x370] sm:$0xff]  ;;  %v501_v52 = vld [vmem:[%s2466_s3 + $0x168] sm:$0xff] }
  0x65   :  { %615 = vmatpush1.msra.mxu0 %v468_v54  ;;  %728 = vmatpush1.msra.mxu1 %v532_v55  ;;  %v565_v53 = vld [vmem:[%s2466_s3 + $0x368] sm:$0xff]  ;;  %v500_v54 = vld [vmem:[%s2466_s3 + $0x160] sm:$0xff] }
  0x66   :  { %616 = vmatprep.subr.mxu0 %v467_v56  ;;  %729 = vmatprep.subr.mxu1 %v531_v57  ;;  %v564_v55 = vld [vmem:[%s2466_s3 + $0x360] sm:$0xff]  ;;  %v499_v56 = vld [vmem:[%s2466_s3 + $0x158] sm:$0xff] }
  0x67   :  { %617 = vmatpush1.msra.mxu0 %v466_v58  ;;  %730 = vmatpush1.msra.mxu1 %v530_v59  ;;  %v563_v57 = vld [vmem:[%s2466_s3 + $0x358] sm:$0xff]  ;;  %v498_v58 = vld [vmem:[%s2466_s3 + $0x150] sm:$0xff] }
  0x68   :  { %618 = vmatprep.subr.mxu0 %v465_v60  ;;  %731 = vmatprep.subr.mxu1 %v529_v61  ;;  %v562_v59 = vld [vmem:[%s2466_s3 + $0x350] sm:$0xff]  ;;  %v497_v60 = vld [vmem:[%s2466_s3 + $0x148] sm:$0xff] }
  0x69   :  { %619 = vmatpush1.msra.mxu0 %v464_v62  ;;  %732 = vmatpush1.msra.mxu1 %v528_v63  ;;  %v561_v61 = vld [vmem:[%s2466_s3 + $0x348] sm:$0xff]  ;;  %v496_v62 = vld [vmem:[%s2466_s3 + $0x140] sm:$0xff] }
  0x6a   :  { %620 = vmatprep.subr.mxu0 %v463_v0  ;;  %733 = vmatprep.subr.mxu1 %v527_v1  ;;  %v560_v63 = vld [vmem:[%s2466_s3 + $0x340] sm:$0xff]  ;;  %v495_v0 = vld [vmem:[%s2466_s3 + $0x138] sm:$0xff] }
  0x6b   :  { %621 = vmatpush1.msra.mxu0 %v462_v2  ;;  %734 = vmatpush1.msra.mxu1 %v526_v3  ;;  %v559_v1 = vld [vmem:[%s2466_s3 + $0x338] sm:$0xff]  ;;  %v494_v2 = vld [vmem:[%s2466_s3 + $0x130] sm:$0xff] }
  0x6c   :  { %622 = vmatprep.subr.mxu0 %v461_v4  ;;  %735 = vmatprep.subr.mxu1 %v525_v5  ;;  %v558_v3 = vld [vmem:[%s2466_s3 + $0x330] sm:$0xff]  ;;  %v493_v4 = vld [vmem:[%s2466_s3 + $0x128] sm:$0xff] }
  0x6d   :  { %623 = vmatpush1.msra.mxu0 %v460_v6  ;;  %736 = vmatpush1.msra.mxu1 %v524_v7  ;;  %v557_v5 = vld [vmem:[%s2466_s3 + $0x328] sm:$0xff]  ;;  %v492_v6 = vld [vmem:[%s2466_s3 + $0x120] sm:$0xff] }
  0x6e   :  { %624 = vmatprep.subr.mxu0 %v459_v8  ;;  %737 = vmatprep.subr.mxu1 %v523_v9  ;;  %v556_v7 = vld [vmem:[%s2466_s3 + $0x320] sm:$0xff]  ;;  %v491_v8 = vld [vmem:[%s2466_s3 + $0x118] sm:$0xff] }
  0x6f   :  { %625 = vmatpush1.msra.mxu0 %v458_v10  ;;  %738 = vmatpush1.msra.mxu1 %v522_v11  ;;  %v555_v9 = vld [vmem:[%s2466_s3 + $0x318] sm:$0xff]  ;;  %v490_v10 = vld [vmem:[%s2466_s3 + $0x110] sm:$0xff] }
  0x70   :  { %626 = vmatprep.subr.mxu0 %v457_v12  ;;  %739 = vmatprep.subr.mxu1 %v521_v13  ;;  %v554_v11 = vld [vmem:[%s2466_s3 + $0x310] sm:$0xff]  ;;  %v489_v12 = vld [vmem:[%s2466_s3 + $0x108] sm:$0xff] }
  0x71   :  { %627 = vmatpush1.msra.mxu0 %v456_v14  ;;  %740 = vmatpush1.msra.mxu1 %v520_v15  ;;  %v553_v13 = vld [vmem:[%s2466_s3 + $0x308] sm:$0xff]  ;;  %v488_v14 = vld [vmem:[%s2466_s3 + $0x100] sm:$0xff] }
  0x72   :  { %628 = vmatprep.subr.mxu0 %v519_v16  ;;  %741 = vmatprep.subr.mxu1 %v583_v17  ;;  %v552_v15 = vld [vmem:[%s2466_s3 + $0x300] sm:$0xff]  ;;  %v869_v16 = vld [vmem:[%s2467_s5 + $0xf8] sm:$0xff]  ;;  %v178_v17 = vlaneseq }
  0x73   :  { %629 = vmatpush2.msra.mxu0 %v518_v18  ;;  %742 = vmatpush2.msra.mxu1 %v582_v19 }
  0x74   :  { %630 = vmatprep.subr.mxu0 %v517_v20  ;;  %743 = vmatprep.subr.mxu1 %v581_v21  ;;  %v2213_v18 = vshrl.u32 %v178_v17, 7  ;;  %v176_v21 = vld [vmem:[%s2468_s2] sm:$0xf] }
  0x75   :  { %631 = vmatpush2.msra.mxu0 %v516_v22  ;;  %744 = vmatpush2.msra.mxu1 %v580_v23 }
  0x76   :  { %632 = vmatprep.subr.mxu0 %v515_v24  ;;  %745 = vmatprep.subr.mxu1 %v579_v25  ;;  %v188_v19 = vsub.s32 2, %v2213_v18  ;;  %v180_v20 = vsub.s32 0, %v2213_v18  ;;  %v184_v22 = vsub.s32 1, %v2213_v18  ;;  %v192_v23 = vsub.s32 3, %v2213_v18 }
  0x77   :  { %633 = vmatpush2.msra.mxu0 %v514_v26  ;;  %746 = vmatpush2.msra.mxu1 %v578_v27 }
  0x78   :  { %634 = vmatprep.subr.mxu0 %v513_v28  ;;  %747 = vmatprep.subr.mxu1 %v577_v29  ;;  %v2222_v24 = vrot.slane %v176_v21, %v188_v19  ;;  %v2226_v25 = vrot.slane %v176_v21, %v180_v20  ;;  %v2230_v26 = vrot.slane %v176_v21, %v184_v22 }
  0x79   :  { %635 = vmatpush2.msra.mxu0 %v512_v30  ;;  %748 = vmatpush2.msra.mxu1 %v576_v31  ;;  %v2232_v27 = vrot.slane %v176_v21, %v192_v23 }
  0x7a   :  { %636 = vmatprep.subr.mxu0 %v511_v32  ;;  %749 = vmatprep.subr.mxu1 %v575_v33 }
  0x7b   :  { %637 = vmatpush2.msra.mxu0 %v510_v34  ;;  %750 = vmatpush2.msra.mxu1 %v574_v35 }
  0x7c   :  { %638 = vmatprep.subr.mxu0 %v509_v36  ;;  %751 = vmatprep.subr.mxu1 %v573_v37 }
  0x7d   :  { %639 = vmatpush2.msra.mxu0 %v508_v38  ;;  %752 = vmatpush2.msra.mxu1 %v572_v39 }
  0x7e   :  { %640 = vmatprep.subr.mxu0 %v507_v40  ;;  %753 = vmatprep.subr.mxu1 %v571_v41 }
  0x7f   :  { %641 = vmatpush2.msra.mxu0 %v506_v42  ;;  %754 = vmatpush2.msra.mxu1 %v570_v43 }
  0x80   :  { %642 = vmatprep.subr.mxu0 %v505_v44  ;;  %755 = vmatprep.subr.mxu1 %v569_v45 }
  0x81   :  { %643 = vmatpush2.msra.mxu0 %v504_v46  ;;  %756 = vmatpush2.msra.mxu1 %v568_v47  ;;  %v853_v46 = vld [vmem:[%s2467_s5 + $0x78] sm:$0xff] }
  0x82   :  { %644 = vmatprep.subr.mxu0 %v503_v48  ;;  %757 = vmatprep.subr.mxu1 %v567_v49  ;;  %v868_v49 = vld [vmem:[%s2467_s5 + $0xf0] sm:$0xff] }
  0x83   :  { %645 = vmatpush2.msra.mxu0 %v502_v50  ;;  %758 = vmatpush2.msra.mxu1 %v566_v51 }
  0x84   :  { %646 = vmatprep.subr.mxu0 %v501_v52  ;;  %759 = vmatprep.subr.mxu1 %v565_v53 }
  0x85   :  { %647 = vmatpush2.msra.mxu0 %v500_v54  ;;  %760 = vmatpush2.msra.mxu1 %v564_v55 }
  0x86   :  { %648 = vmatprep.subr.mxu0 %v499_v56  ;;  %761 = vmatprep.subr.mxu1 %v563_v57 }
  0x87   :  { %649 = vmatpush2.msra.mxu0 %v498_v58  ;;  %762 = vmatpush2.msra.mxu1 %v562_v59 }
  0x88   :  { %650 = vmatprep.subr.mxu0 %v497_v60  ;;  %763 = vmatprep.subr.mxu1 %v561_v61  ;;  %v852_v60 = vld [vmem:[%s2467_s5 + $0x70] sm:$0xff] }
  0x89   :  { %651 = vmatpush2.msra.mxu0 %v496_v62  ;;  %764 = vmatpush2.msra.mxu1 %v560_v63  ;;  %v867_v63 = vld [vmem:[%s2467_s5 + $0xe8] sm:$0xff] }
  0x8a   :  { %652 = vmatprep.subr.mxu0 %v495_v0  ;;  %765 = vmatprep.subr.mxu1 %v559_v1 }
  0x8b   :  { %653 = vmatpush2.msra.mxu0 %v494_v2  ;;  %766 = vmatpush2.msra.mxu1 %v558_v3 }
  0x8c   :  { %654 = vmatprep.subr.mxu0 %v493_v4  ;;  %767 = vmatprep.subr.mxu1 %v557_v5 }
  0x8d   :  { %655 = vmatpush2.msra.mxu0 %v492_v6  ;;  %768 = vmatpush2.msra.mxu1 %v556_v7 }
  0x8e   :  { %656 = vmatprep.subr.mxu0 %v491_v8  ;;  %769 = vmatprep.subr.mxu1 %v555_v9 }
  0x8f   :  { %657 = vmatpush2.msra.mxu0 %v490_v10  ;;  %770 = vmatpush2.msra.mxu1 %v554_v11  ;;  %v851_v10 = vld [vmem:[%s2467_s5 + $0x68] sm:$0xff] }
  0x90   :  { %658 = vmatprep.subr.mxu0 %v489_v12  ;;  %771 = vmatprep.subr.mxu1 %v553_v13  ;;  %v866_v13 = vld [vmem:[%s2467_s5 + $0xe0] sm:$0xff] }
  0x91   :  { %659 = vmatpush2.msra.mxu0 %v488_v14  ;;  %772 = vmatpush2.msra.mxu1 %v552_v15 }
  0x92   :  { %1188 = vmatprep.subr.mxu0 %v869_v16 }
 0x103   :  { %v264_v28 = vpop.f32.mrf.mxu0  ;;  %v377_v29 = vpop.f32.mrf.mxu1 }
 0x104   :  { %v378_v30 = vadd.f32 %v377_v29, %v2222_v24  ;;  %v265_v31 = vadd.f32 %v264_v28, %v2226_v25 }
 0x105   :  { %v266_v32 = vpop.f32.mrf.mxu0  ;;  %v379_v33 = vpop.f32.mrf.mxu1 }
 0x106   :  { %v267_v34 = vadd.f32 %v266_v32, %v2230_v26  ;;  %v380_v35 = vadd.f32 %v379_v33, %v2232_v27  ;;  %v426_v36 = vmax.f32 %v378_v30, 0.0  ;;  %v424_v42 = vmax.f32 %v265_v31, 0.0  ;;  %v850_v31 = vld [vmem:[%s2467_s5 + $0x60] sm:$0xff] }
 0x107   :  { %v270_v37 = vpop.f32.mrf.mxu0  ;;  %v383_v38 = vpop.f32.mrf.mxu1 }
 0x108   :  { %v425_v39 = vmax.f32 %v267_v34, 0.0  ;;  %v427_v40 = vmax.f32 %v380_v35, 0.0  ;;  %v384_v41 = vadd.f32 %v383_v38, %v2222_v24  ;;  %v271_v43 = vadd.f32 %v270_v37, %v2226_v25  ;;  %v865_v34 = vld [vmem:[%s2467_s5 + $0xd8] sm:$0xff] }
 0x109   :  { %v272_v44 = vpop.f32.mrf.mxu0  ;;  %v385_v45 = vpop.f32.mrf.mxu1 }
 0x10a   :  { %v273_v47 = vadd.f32 %v272_v44, %v2230_v26  ;;  %v386_v48 = vadd.f32 %v385_v45, %v2232_v27  ;;  %660 = vmatprep.mubr.f32.mxu0 %v425_v39  ;;  %773 = vmatprep.mubr.f32.mxu1 %v427_v40  ;;  %v430_v50 = vmax.f32 %v384_v41, 0.0  ;;  %v428_v56 = vmax.f32 %v271_v43, 0.0  ;;  %v849_v45 = vld [vmem:[%s2467_s5 + $0x58] sm:$0xff] }
 0x10b   :  { %v276_v51 = vpop.f32.mrf.mxu0  ;;  %v389_v52 = vpop.f32.mrf.mxu1  ;;  %661 = vmatmul.mubr.f32.vlgmr.msra.gmra.mxu0 %v424_v42  ;;  %774 = vmatmul.mubr.f32.vlgmr.msra.gmra.mxu1 %v426_v36 }
 0x10c   :  { %v429_v53 = vmax.f32 %v273_v47, 0.0  ;;  %v431_v54 = vmax.f32 %v386_v48, 0.0  ;;  %v390_v55 = vadd.f32 %v389_v52, %v2222_v24  ;;  %1189 = vmatpush3.msra.mxu0 %v853_v46  ;;  %v277_v57 = vadd.f32 %v276_v51, %v2226_v25  ;;  %v864_v48 = vld [vmem:[%s2467_s5 + $0xd0] sm:$0xff] }
 0x10d   :  { %v278_v58 = vpop.f32.mrf.mxu0  ;;  %v391_v59 = vpop.f32.mrf.mxu1  ;;  %1190 = vmatprep.subr.mxu0 %v868_v49 }
 0x10e   :  { %v279_v61 = vadd.f32 %v278_v58, %v2230_v26  ;;  %v392_v62 = vadd.f32 %v391_v59, %v2232_v27  ;;  %666 = vmatprep.mubr.f32.mxu0 %v429_v53  ;;  %779 = vmatprep.mubr.f32.mxu1 %v431_v54  ;;  %v434_v0 = vmax.f32 %v390_v55, 0.0  ;;  %v432_v6 = vmax.f32 %v277_v57, 0.0  ;;  %v848_v59 = vld [vmem:[%s2467_s5 + $0x50] sm:$0xff] }
 0x10f   :  { %v282_v1 = vpop.f32.mrf.mxu0  ;;  %v395_v2 = vpop.f32.mrf.mxu1  ;;  %667 = vmatmul.mubr.f32.gmra.mxu0 %v428_v56  ;;  %780 = vmatmul.mubr.f32.gmra.mxu1 %v430_v50 }
 0x110   :  { %v433_v3 = vmax.f32 %v279_v61, 0.0  ;;  %v435_v4 = vmax.f32 %v392_v62, 0.0  ;;  %v396_v5 = vadd.f32 %v395_v2, %v2222_v24  ;;  %1191 = vmatpush3.msra.mxu0 %v852_v60  ;;  %v283_v7 = vadd.f32 %v282_v1, %v2226_v25  ;;  %v863_v62 = vld [vmem:[%s2467_s5 + $0xc8] sm:$0xff] }
 0x111   :  { %v284_v8 = vpop.f32.mrf.mxu0  ;;  %v397_v9 = vpop.f32.mrf.mxu1  ;;  %1192 = vmatprep.subr.mxu0 %v867_v63 }
 0x112   :  { %v285_v11 = vadd.f32 %v284_v8, %v2230_v26  ;;  %v398_v12 = vadd.f32 %v397_v9, %v2232_v27  ;;  %672 = vmatprep.mubr.f32.mxu0 %v433_v3  ;;  %785 = vmatprep.mubr.f32.mxu1 %v435_v4  ;;  %v438_v14 = vmax.f32 %v396_v5, 0.0  ;;  %v436_v23 = vmax.f32 %v283_v7, 0.0  ;;  %v847_v9 = vld [vmem:[%s2467_s5 + $0x48] sm:$0xff] }
 0x113   :  { %v288_v15 = vpop.f32.mrf.mxu0  ;;  %v401_v16 = vpop.f32.mrf.mxu1  ;;  %673 = vmatmul.mubr.f32.gmra.mxu0 %v432_v6  ;;  %786 = vmatmul.mubr.f32.gmra.mxu1 %v434_v0 }
 0x114   :  { %v437_v17 = vmax.f32 %v285_v11, 0.0  ;;  %v439_v19 = vmax.f32 %v398_v12, 0.0  ;;  %v402_v21 = vadd.f32 %v401_v16, %v2222_v24  ;;  %1193 = vmatpush3.msra.mxu0 %v851_v10  ;;  %v289_v28 = vadd.f32 %v288_v15, %v2226_v25  ;;  %v845_v15 = vld [vmem:[%s2467_s5 + $0x38] sm:$0xff]  ;;  %v860_v16 = vld [vmem:[%s2467_s5 + $0xb0] sm:$0xff] }
 0x115   :  { %v290_v29 = vpop.f32.mrf.mxu0  ;;  %v403_v30 = vpop.f32.mrf.mxu1  ;;  %1194 = vmatprep.subr.mxu0 %v866_v13 }
 0x116   :  { %v291_v32 = vadd.f32 %v290_v29, %v2230_v26  ;;  %v404_v33 = vadd.f32 %v403_v30, %v2232_v27  ;;  %678 = vmatprep.mubr.f32.mxu0 %v437_v17  ;;  %791 = vmatprep.mubr.f32.mxu1 %v439_v19  ;;  %v442_v35 = vmax.f32 %v402_v21, 0.0  ;;  %v440_v41 = vmax.f32 %v289_v28, 0.0  ;;  %v844_v17 = vld [vmem:[%s2467_s5 + $0x30] sm:$0xff]  ;;  %v859_v19 = vld [vmem:[%s2467_s5 + $0xa8] sm:$0xff]  ;;  %v842_v28 = vld [vmem:[%s2467_s5 + $0x20] sm:$0xff] }
 0x117   :  { %v294_v36 = vpop.f32.mrf.mxu0  ;;  %v407_v37 = vpop.f32.mrf.mxu1  ;;  %679 = vmatmul.mubr.f32.gmra.mxu0 %v436_v23  ;;  %792 = vmatmul.mubr.f32.gmra.mxu1 %v438_v14  ;;  %v843_v21 = vld [vmem:[%s2467_s5 + $0x28] sm:$0xff]  ;;  %v858_v23 = vld [vmem:[%s2467_s5 + $0xa0] sm:$0xff]  ;;  %v857_v29 = vld [vmem:[%s2467_s5 + $0x98] sm:$0xff] }
 0x118   :  { %v441_v38 = vmax.f32 %v291_v32, 0.0  ;;  %v443_v39 = vmax.f32 %v404_v33, 0.0  ;;  %v408_v40 = vadd.f32 %v407_v37, %v2222_v24  ;;  %1195 = vmatpush3.msra.mxu0 %v850_v31  ;;  %v295_v42 = vadd.f32 %v294_v36, %v2226_v25  ;;  %v841_v30 = vld [vmem:[%s2467_s5 + $0x18] sm:$0xff]  ;;  %v856_v31 = vld [vmem:[%s2467_s5 + $0x90] sm:$0xff]  ;;  %v855_v33 = vld [vmem:[%s2467_s5 + $0x88] sm:$0xff] }
 0x119   :  { %v296_v43 = vpop.f32.mrf.mxu0  ;;  %v409_v44 = vpop.f32.mrf.mxu1  ;;  %1196 = vmatprep.subr.mxu0 %v865_v34  ;;  %v840_v32 = vld [vmem:[%s2467_s5 + $0x10] sm:$0xff]  ;;  %v839_v34 = vld [vmem:[%s2467_s5 + $0x8] sm:$0xff]  ;;  %v838_v36 = vld [vmem:[%s2467_s5] sm:$0xff] }
 0x11a   :  { %v297_v46 = vadd.f32 %v296_v43, %v2230_v26  ;;  %v410_v47 = vadd.f32 %v409_v44, %v2232_v27  ;;  %684 = vmatprep.mubr.f32.mxu0 %v441_v38  ;;  %797 = vmatprep.mubr.f32.mxu1 %v443_v39  ;;  %v446_v49 = vmax.f32 %v408_v40, 0.0  ;;  %v444_v55 = vmax.f32 %v295_v42, 0.0  ;;  %v1005_v37 = vld [vmem:[%s2469_s7 + $0x78] sm:$0xff]  ;;  %v1004_v38 = vld [vmem:[%s2469_s7 + $0x70] sm:$0xff]  ;;  %v1003_v39 = vld [vmem:[%s2469_s7 + $0x68] sm:$0xff] }
 0x11b   :  { %v300_v50 = vpop.f32.mrf.mxu0  ;;  %v413_v51 = vpop.f32.mrf.mxu1  ;;  %685 = vmatmul.mubr.f32.gmra.mxu0 %v440_v41  ;;  %798 = vmatmul.mubr.f32.gmra.mxu1 %v442_v35  ;;  %v854_v35 = vld [vmem:[%s2467_s5 + $0x80] sm:$0xff]  ;;  %v1001_v41 = vld [vmem:[%s2469_s7 + $0x58] sm:$0xff]  ;;  %v1000_v42 = vld [vmem:[%s2469_s7 + $0x50] sm:$0xff] }
 0x11c   :  { %v445_v52 = vmax.f32 %v297_v46, 0.0  ;;  %v447_v53 = vmax.f32 %v410_v47, 0.0  ;;  %v414_v54 = vadd.f32 %v413_v51, %v2222_v24  ;;  %1197 = vmatpush3.msra.mxu0 %v849_v45  ;;  %v301_v56 = vadd.f32 %v300_v50, %v2226_v25  ;;  %1268 = vmatprep.subr.mxu1 %v1005_v37  ;;  %v1002_v40 = vld [vmem:[%s2469_s7 + $0x60] sm:$0xff]  ;;  %v999_v43 = vld [vmem:[%s2469_s7 + $0x48] sm:$0xff]  ;;  %v997_v45 = vld [vmem:[%s2469_s7 + $0x38] sm:$0xff] }
 0x11d   :  { %v302_v57 = vpop.f32.mrf.mxu0  ;;  %v415_v58 = vpop.f32.mrf.mxu1  ;;  %1198 = vmatprep.subr.mxu0 %v864_v48  ;;  %1269 = vmatpush3.msra.mxu1 %v1005_v37  ;;  %v998_v44 = vld [vmem:[%s2469_s7 + $0x40] sm:$0xff]  ;;  %v996_v46 = vld [vmem:[%s2469_s7 + $0x30] sm:$0xff] }
 0x11e   :  { %v303_v60 = vadd.f32 %v302_v57, %v2230_v26  ;;  %v416_v61 = vadd.f32 %v415_v58, %v2232_v27  ;;  %690 = vmatprep.mubr.f32.mxu0 %v445_v52  ;;  %803 = vmatprep.mubr.f32.mxu1 %v447_v53  ;;  %v450_v63 = vmax.f32 %v414_v54, 0.0  ;;  %v448_v5 = vmax.f32 %v301_v56, 0.0  ;;  %v584_v47 = vld [vmem:[%s2470_s4] sm:$0x3] }
 0x11f   :  { %v306_v0 = vpop.f32.mrf.mxu0  ;;  %v419_v1 = vpop.f32.mrf.mxu1  ;;  %691 = vmatmul.mubr.f32.gmra.mxu0 %v444_v55  ;;  %804 = vmatmul.mubr.f32.gmra.mxu1 %v446_v49  ;;  %v2394_v48 = vrot.slane %v584_v47, %v180_v20  ;;  %v2398_v49 = vrot.slane %v584_v47, %v184_v22 }
 0x120   :  { %v449_v2 = vmax.f32 %v303_v60, 0.0  ;;  %v451_v3 = vmax.f32 %v416_v61, 0.0  ;;  %v420_v4 = vadd.f32 %v419_v1, %v2222_v24  ;;  %1199 = vmatpush3.msra.mxu0 %v848_v59  ;;  %v307_v6 = vadd.f32 %v306_v0, %v2226_v25  ;;  %v862_v24 = vld [vmem:[%s2467_s5 + $0xc0] sm:$0xff]  ;;  %1270 = vmatprep.subr.mxu1 %v1004_v38 }
 0x121   :  { %v308_v7 = vpop.f32.mrf.mxu0  ;;  %v421_v8 = vpop.f32.mrf.mxu1  ;;  %1200 = vmatprep.subr.mxu0 %v863_v62  ;;  %1271 = vmatpush3.msra.mxu1 %v1004_v38 }
 0x122   :  { %v309_v10 = vadd.f32 %v308_v7, %v2230_v26  ;;  %v422_v11 = vadd.f32 %v421_v8, %v2232_v27  ;;  %696 = vmatprep.mubr.f32.mxu0 %v449_v2  ;;  %809 = vmatprep.mubr.f32.mxu1 %v451_v3  ;;  %v454_v12 = vmax.f32 %v420_v4, 0.0  ;;  %v452_v14 = vmax.f32 %v307_v6, 0.0  ;;  %v846_v26 = vld [vmem:[%s2467_s5 + $0x40] sm:$0xff]  ;;  %v861_v27 = vld [vmem:[%s2467_s5 + $0xb8] sm:$0xff] }
 0x123   :  { %697 = vmatmul.mubr.f32.gmra.mxu0 %v448_v5  ;;  %810 = vmatmul.mubr.f32.gmra.mxu1 %v450_v63 }
 0x124   :  { %v453_v25 = vmax.f32 %v309_v10, 0.0  ;;  %v455_v13 = vmax.f32 %v422_v11, 0.0  ;;  %1201 = vmatpush3.msra.mxu0 %v847_v9  ;;  %1272 = vmatprep.subr.mxu1 %v1003_v39 }
 0x125   :  { %1202 = vmatprep.subr.mxu0 %v862_v24  ;;  %1273 = vmatpush3.msra.mxu1 %v1003_v39 }
 0x126   :  { %702 = vmatprep.mubr.f32.mxu0 %v453_v25  ;;  %815 = vmatprep.mubr.f32.mxu1 %v455_v13 }
 0x127   :  { %703 = vmatmul.mubr.f32.gmra.mxu0 %v452_v14  ;;  %816 = vmatmul.mubr.f32.gmra.mxu1 %v454_v12 }
 0x128   :  { %1203 = vmatpush3.msra.mxu0 %v846_v26  ;;  %1274 = vmatprep.subr.mxu1 %v1002_v40 }
 0x129   :  { %1204 = vmatprep.subr.mxu0 %v861_v27  ;;  %1275 = vmatpush3.msra.mxu1 %v1002_v40 }
 0x12a   :  { %1205 = vmatpush3.msra.mxu0 %v845_v15  ;;  %1276 = vmatprep.subr.mxu1 %v1001_v41 }
 0x12b   :  { %1206 = vmatprep.subr.mxu0 %v860_v16  ;;  %1277 = vmatpush3.msra.mxu1 %v1001_v41 }
 0x12c   :  { %1207 = vmatpush3.msra.mxu0 %v844_v17  ;;  %1278 = vmatprep.subr.mxu1 %v1000_v42 }
 0x12d   :  { %1208 = vmatprep.subr.mxu0 %v859_v19  ;;  %1279 = vmatpush3.msra.mxu1 %v1000_v42 }
 0x12e   :  { %1209 = vmatpush3.msra.mxu0 %v843_v21  ;;  %1280 = vmatprep.subr.mxu1 %v999_v43 }
 0x12f   :  { %1210 = vmatprep.subr.mxu0 %v858_v23  ;;  %1281 = vmatpush3.msra.mxu1 %v999_v43 }
 0x130   :  { %1211 = vmatpush3.msra.mxu0 %v842_v28  ;;  %1282 = vmatprep.subr.mxu1 %v998_v44 }
 0x131   :  { %1212 = vmatprep.subr.mxu0 %v857_v29  ;;  %1283 = vmatpush3.msra.mxu1 %v998_v44 }
 0x132   :  { %1213 = vmatpush3.msra.mxu0 %v841_v30  ;;  %1284 = vmatprep.subr.mxu1 %v997_v45 }
 0x133   :  { %1214 = vmatprep.subr.mxu0 %v856_v31  ;;  %1285 = vmatpush3.msra.mxu1 %v997_v45 }
 0x134   :  { %1215 = vmatpush3.msra.mxu0 %v840_v32  ;;  %1286 = vmatprep.subr.mxu1 %v996_v46 }
 0x135   :  { %1216 = vmatprep.subr.mxu0 %v855_v33  ;;  %1287 = vmatpush3.msra.mxu1 %v996_v46 }
 0x136   :  { %1217 = vmatpush3.msra.mxu0 %v839_v34 }
 0x137   :  { %1218 = vmatprep.subr.mxu0 %v854_v35 }
 0x138   :  { %1219 = vmatpush3.msra.mxu0 %v838_v36 }
 0x1cb   :  { %v662_v50 = vpop.f32.mrf.mxu0  ;;  %v775_v51 = vpop.f32.mrf.mxu1 }
 0x1cc   :  { %v663_v52 = vadd.f32 %v662_v50, %v2394_v48 }
 0x1cd   :  { %v664_v53 = vpop.f32.mrf.mxu0  ;;  %v777_v54 = vpop.f32.mrf.mxu1 }
 0x1ce   :  { %v665_v55 = vadd.f32 %v664_v53, %v2398_v49  ;;  %v776_v56 = vadd.f32 %v775_v51, %v663_v52 }
 0x1cf   :  { %v668_v57 = vpop.f32.mrf.mxu0  ;;  %v781_v58 = vpop.f32.mrf.mxu1 }
 0x1d0   :  { %v778_v59 = vadd.f32 %v777_v54, %v665_v55  ;;  %v669_v60 = vadd.f32 %v668_v57, %v2394_v48  ;;  %v822_v22 = vmax.f32 %v776_v56, 0.0 }
 0x1d1   :  { %v670_v20 = vpop.f32.mrf.mxu0  ;;  %v783_v61 = vpop.f32.mrf.mxu1 }
 0x1d2   :  { %v823_v62 = vmax.f32 %v778_v59, 0.0  ;;  %v671_v18 = vadd.f32 %v670_v20, %v2398_v49  ;;  %v782_v63 = vadd.f32 %v781_v58, %v669_v60 }
 0x1d3   :  { %v674_v0 = vpop.f32.mrf.mxu0  ;;  %v787_v1 = vpop.f32.mrf.mxu1 }
 0x1d4   :  { %v784_v2 = vadd.f32 %v783_v61, %v671_v18  ;;  %v675_v3 = vadd.f32 %v674_v0, %v2394_v48  ;;  %941 = vmatprep.mubr.f32.mxu0 %v823_v62  ;;  %v824_v8 = vmax.f32 %v782_v63, 0.0 }
 0x1d5   :  { %v676_v4 = vpop.f32.mrf.mxu0  ;;  %v789_v5 = vpop.f32.mrf.mxu1  ;;  %942 = vmatmul.mubr.f32.vlgmr.msra.gmra.mxu0 %v822_v22 }
 0x1d6   :  { %v825_v6 = vmax.f32 %v784_v2, 0.0  ;;  %v677_v7 = vadd.f32 %v676_v4, %v2398_v49  ;;  %v788_v9 = vadd.f32 %v787_v1, %v675_v3  ;;  %v993_v1 = vld [vmem:[%s2469_s7 + $0x18] sm:$0xff]  ;;  %v992_v2 = vld [vmem:[%s2469_s7 + $0x10] sm:$0xff]  ;;  %v991_v3 = vld [vmem:[%s2469_s7 + $0x8] sm:$0xff] }
 0x1d7   :  { %v680_v10 = vpop.f32.mrf.mxu0  ;;  %v793_v11 = vpop.f32.mrf.mxu1  ;;  %v990_v4 = vld [vmem:[%s2469_s7] sm:$0xff] }
 0x1d8   :  { %v790_v24 = vadd.f32 %v789_v5, %v677_v7  ;;  %v681_v12 = vadd.f32 %v680_v10, %v2394_v48  ;;  %946 = vmatprep.mubr.f32.mxu0 %v825_v6  ;;  %v826_v27 = vmax.f32 %v788_v9, 0.0  ;;  %v1178_v6 = vld [vmem:[%s2471_s6] ss:$0 sm:$0xff] }
 0x1d9   :  { %v682_v25 = vpop.f32.mrf.mxu0  ;;  %v795_v13 = vpop.f32.mrf.mxu1  ;;  %947 = vmatmul.mubr.f32.gmra.mxu0 %v824_v8 }
 0x1da   :  { %v827_v14 = vmax.f32 %v790_v24, 0.0  ;;  %v683_v26 = vadd.f32 %v682_v25, %v2398_v49  ;;  %v794_v15 = vadd.f32 %v793_v11, %v681_v12 }
 0x1db   :  { %v686_v16 = vpop.f32.mrf.mxu0  ;;  %v799_v17 = vpop.f32.mrf.mxu1 }
 0x1dc   :  { %v796_v19 = vadd.f32 %v795_v13, %v683_v26  ;;  %v687_v21 = vadd.f32 %v686_v16, %v2394_v48  ;;  %951 = vmatprep.mubr.f32.mxu0 %v827_v14  ;;  %v828_v31 = vmax.f32 %v794_v15, 0.0 }
 0x1dd   :  { %v688_v23 = vpop.f32.mrf.mxu0  ;;  %v801_v28 = vpop.f32.mrf.mxu1  ;;  %952 = vmatmul.mubr.f32.gmra.mxu0 %v826_v27 }
 0x1de   :  { %v829_v29 = vmax.f32 %v796_v19, 0.0  ;;  %v689_v30 = vadd.f32 %v688_v23, %v2398_v49  ;;  %v800_v32 = vadd.f32 %v799_v17, %v687_v21 }
 0x1df   :  { %v692_v33 = vpop.f32.mrf.mxu0  ;;  %v805_v34 = vpop.f32.mrf.mxu1 }
 0x1e0   :  { %v802_v35 = vadd.f32 %v801_v28, %v689_v30  ;;  %v693_v36 = vadd.f32 %v692_v33, %v2394_v48  ;;  %956 = vmatprep.mubr.f32.mxu0 %v829_v29  ;;  %v830_v41 = vmax.f32 %v800_v32, 0.0 }
 0x1e1   :  { %v694_v37 = vpop.f32.mrf.mxu0  ;;  %v807_v38 = vpop.f32.mrf.mxu1  ;;  %957 = vmatmul.mubr.f32.gmra.mxu0 %v828_v31 }
 0x1e2   :  { %v831_v39 = vmax.f32 %v802_v35, 0.0  ;;  %v695_v40 = vadd.f32 %v694_v37, %v2398_v49  ;;  %v806_v42 = vadd.f32 %v805_v34, %v693_v36 }
 0x1e3   :  { %v698_v43 = vpop.f32.mrf.mxu0  ;;  %v811_v44 = vpop.f32.mrf.mxu1 }
 0x1e4   :  { %v808_v45 = vadd.f32 %v807_v38, %v695_v40  ;;  %v699_v46 = vadd.f32 %v698_v43, %v2394_v48  ;;  %961 = vmatprep.mubr.f32.mxu0 %v831_v39  ;;  %v832_v53 = vmax.f32 %v806_v42, 0.0 }
 0x1e5   :  { %v700_v47 = vpop.f32.mrf.mxu0  ;;  %v813_v50 = vpop.f32.mrf.mxu1  ;;  %962 = vmatmul.mubr.f32.gmra.mxu0 %v830_v41 }
 0x1e6   :  { %v833_v51 = vmax.f32 %v808_v45, 0.0  ;;  %v701_v52 = vadd.f32 %v700_v47, %v2398_v49  ;;  %v812_v54 = vadd.f32 %v811_v44, %v699_v46 }
 0x1e7   :  { %v704_v55 = vpop.f32.mrf.mxu0  ;;  %v817_v56 = vpop.f32.mrf.mxu1 }
 0x1e8   :  { %v814_v57 = vadd.f32 %v813_v50, %v701_v52  ;;  %v705_v58 = vadd.f32 %v704_v55, %v2394_v48  ;;  %966 = vmatprep.mubr.f32.mxu0 %v833_v51  ;;  %v834_v61 = vmax.f32 %v812_v54, 0.0  ;;  %v995_v48 = vld [vmem:[%s2469_s7 + $0x28] sm:$0xff]  ;;  %v1179_v51 = vld [vmem:[%s2472_s8] ss:$0 sm:$0xff] }
 0x1e9   :  { %v706_v59 = vpop.f32.mrf.mxu0  ;;  %967 = vmatmul.mubr.f32.gmra.mxu0 %v832_v53  ;;  %v819_v18 = vpop.f32.mrf.mxu1  ;;  %1288 = vmatprep.subr.mxu1 %v995_v48 }
 0x1ea   :  { %v835_v60 = vmax.f32 %v814_v57, 0.0  ;;  %v707_v20 = vadd.f32 %v706_v59, %v2398_v49  ;;  %v818_v62 = vadd.f32 %v817_v56, %v705_v58  ;;  %1289 = vmatpush3.msra.mxu1 %v995_v48  ;;  %v994_v49 = vld [vmem:[%s2469_s7 + $0x20] sm:$0xff] }
 0x1eb   :  { %1290 = vmatprep.subr.mxu1 %v994_v49 }
 0x1ec   :  { %v820_v22 = vadd.f32 %v819_v18, %v707_v20  ;;  %971 = vmatprep.mubr.f32.mxu0 %v835_v60  ;;  %v836_v0 = vmax.f32 %v818_v62, 0.0  ;;  %1291 = vmatpush3.msra.mxu1 %v994_v49 }
 0x1ed   :  { %972 = vmatmul.mubr.f32.gmra.mxu0 %v834_v61  ;;  %1292 = vmatprep.subr.mxu1 %v993_v1 }
 0x1ee   :  { %v837_v63 = vmax.f32 %v820_v22, 0.0  ;;  %1293 = vmatpush3.msra.mxu1 %v993_v1 }
 0x1ef   :  { %1294 = vmatprep.subr.mxu1 %v992_v2 }
 0x1f0   :  { %976 = vmatprep.mubr.f32.mxu0 %v837_v63  ;;  %1295 = vmatpush3.msra.mxu1 %v992_v2 }
 0x1f1   :  { %977 = vmatmul.mubr.f32.gmra.mxu0 %v836_v0  ;;  %1296 = vmatprep.subr.mxu1 %v991_v3 }
 0x1f2   :  { %1297 = vmatpush3.msra.mxu1 %v991_v3 }
 0x1f3   :  { %1298 = vmatprep.subr.mxu1 %v990_v4 }
 0x1f4   :  { %1299 = vmatpush3.msra.mxu1 %v990_v4 }
 0x295   :  { %v1220_v5 = vpop.f32.mrf.mxu0 }
 0x297   :  { %v1221_v7 = vpop.f32.mrf.mxu0 }
 0x298   :  { %v1222_v8 = vadd.f32 %v1221_v7, %v1220_v5 }
 0x299   :  { %v1223_v9 = vpop.f32.mrf.mxu0 }
 0x29a   :  { %v944_v10 = vadd.f32 %v1222_v8, %v1178_v6 }
 0x29b   :  { %v1224_v11 = vpop.f32.mrf.mxu0 }
 0x29c   :  { %v982_v24 = vmax.f32 %v944_v10, 0.0  ;;  %v1225_v12 = vadd.f32 %v1224_v11, %v1223_v9 }
 0x29d   :  { %v1226_v25 = vpop.f32.mrf.mxu0 }
 0x29e   :  { %v949_v13 = vadd.f32 %v1225_v12, %v1178_v6  ;;  %1300 = vmatprep.mubr.f32.mxu1 %v982_v24 }
 0x29f   :  { %v1227_v14 = vpop.f32.mrf.mxu0 }
 0x2a0   :  { %v983_v26 = vmax.f32 %v949_v13, 0.0  ;;  %v1228_v27 = vadd.f32 %v1227_v14, %v1226_v25 }
 0x2a1   :  { %v1229_v15 = vpop.f32.mrf.mxu0 }
 0x2a2   :  { %v954_v16 = vadd.f32 %v1228_v27, %v1178_v6  ;;  %1301 = vmatmul.mubr.f32.vlgmr.msra.gmra.mxu1 %v983_v26 }
 0x2a3   :  { %v1230_v17 = vpop.f32.mrf.mxu0 }
 0x2a4   :  { %v984_v19 = vmax.f32 %v954_v16, 0.0  ;;  %v1231_v21 = vadd.f32 %v1230_v17, %v1229_v15 }
 0x2a5   :  { %v1232_v23 = vpop.f32.mrf.mxu0 }
 0x2a6   :  { %v959_v28 = vadd.f32 %v1231_v21, %v1178_v6  ;;  %1303 = vmatprep.mubr.f32.mxu1 %v984_v19 }
 0x2a7   :  { %v1233_v29 = vpop.f32.mrf.mxu0 }
 0x2a8   :  { %v985_v30 = vmax.f32 %v959_v28, 0.0  ;;  %v1234_v31 = vadd.f32 %v1233_v29, %v1232_v23 }
 0x2a9   :  { %v1235_v32 = vpop.f32.mrf.mxu0 }
 0x2aa   :  { %v964_v33 = vadd.f32 %v1234_v31, %v1178_v6  ;;  %1304 = vmatmul.mubr.f32.gmra.mxu1 %v985_v30 }
 0x2ab   :  { %v1236_v34 = vpop.f32.mrf.mxu0 }
 0x2ac   :  { %v986_v35 = vmax.f32 %v964_v33, 0.0  ;;  %v1237_v36 = vadd.f32 %v1236_v34, %v1235_v32 }
 0x2ad   :  { %v1238_v37 = vpop.f32.mrf.mxu0 }
 0x2ae   :  { %v969_v38 = vadd.f32 %v1237_v36, %v1178_v6  ;;  %1306 = vmatprep.mubr.f32.mxu1 %v986_v35 }
 0x2af   :  { %v1239_v39 = vpop.f32.mrf.mxu0 }
 0x2b0   :  { %v987_v40 = vmax.f32 %v969_v38, 0.0  ;;  %v1240_v41 = vadd.f32 %v1239_v39, %v1238_v37 }
 0x2b1   :  { %v1241_v42 = vpop.f32.mrf.mxu0 }
 0x2b2   :  { %v974_v43 = vadd.f32 %v1240_v41, %v1178_v6  ;;  %1307 = vmatmul.mubr.f32.gmra.mxu1 %v987_v40 }
 0x2b3   :  { %v1242_v44 = vpop.f32.mrf.mxu0 }
 0x2b4   :  { %v988_v45 = vmax.f32 %v974_v43, 0.0  ;;  %v1243_v46 = vadd.f32 %v1242_v44, %v1241_v42 }
 0x2b6   :  { %v979_v47 = vadd.f32 %v1243_v46, %v1178_v6  ;;  %1309 = vmatprep.mubr.f32.mxu1 %v988_v45 }
 0x2b8   :  { %v989_v50 = vmax.f32 %v979_v47, 0.0 }
 0x2ba   :  { %1310 = vmatmul.mubr.f32.gmra.mxu1 %v989_v50 }
 0x362   :  { %v1302_v52 = vpop.f32.mrf.mxu1 }
 0x363   :  { %v1085_v53 = vadd.f32 %v1302_v52, %v1179_v51 }
 0x364   :  { %v1079_v54 = vpop.f32.mrf.mxu1 }
 0x365   :  { %v1181_v55 = vmul.f32 -1.442695, %v1085_v53  ;;  %v1080_v56 = vadd.f32 %v1179_v51, %v1079_v54 }
 0x367   :  { %1312 = vpow2.f32 %v1181_v55  ;;  %v1180_v57 = vmul.f32 -1.442695, %v1080_v56 }
 0x369   :  { %1314 = vpow2.f32 %v1180_v57 }
 0x36a   :  { %v1305_v58 = vpop.f32.mrf.mxu1 }
 0x36b   :  { %v1095_v59 = vadd.f32 %v1305_v58, %v1179_v51 }
 0x36c   :  { %v1089_v60 = vpop.f32.mrf.mxu1 }
 0x36d   :  { %v1183_v20 = vmul.f32 -1.442695, %v1095_v59  ;;  %v1090_v61 = vadd.f32 %v1179_v51, %v1089_v60 }
 0x36f   :  { %1316 = vpow2.f32 %v1183_v20  ;;  %v1182_v62 = vmul.f32 -1.442695, %v1090_v61 }
 0x371   :  { %1318 = vpow2.f32 %v1182_v62 }
 0x372   :  { %v1308_v18 = vpop.f32.mrf.mxu1 }
 0x373   :  { %v1105_v22 = vadd.f32 %v1308_v18, %v1179_v51 }
 0x374   :  { %v1313_v63 = vpop.eup %1312  ;;  %v1099_v0 = vpop.f32.mrf.mxu1 }
 0x375   :  { %v1143_v48 = vadd.f32 1.0, %v1313_v63  ;;  %v1185_v49 = vmul.f32 -1.442695, %v1105_v22  ;;  %v1100_v1 = vadd.f32 %v1179_v51, %v1099_v0 }
 0x376   :  { %v1315_v2 = vpop.eup %1314 }
 0x377   :  { %1320 = vrcp.f32 %v1143_v48  ;;  %v1142_v3 = vadd.f32 1.0, %v1315_v2  ;;  %v1184_v4 = vmul.f32 -1.442695, %v1100_v1 }
 0x378   :  { %1322 = vpow2.f32 %v1185_v49 }
 0x379   :  { %1324 = vrcp.f32 %v1142_v3 }
 0x37a   :  { %1326 = vpow2.f32 %v1184_v4  ;;  %v1311_v5 = vpop.f32.mrf.mxu1 }
 0x37b   :  { %v1115_v6 = vadd.f32 %v1311_v5, %v1179_v51 }
 0x37c   :  { %v1317_v7 = vpop.eup %1316  ;;  %v1109_v8 = vpop.f32.mrf.mxu1 }
 0x37d   :  { %v1145_v9 = vadd.f32 1.0, %v1317_v7  ;;  %v1187_v10 = vmul.f32 -1.442695, %v1115_v6  ;;  %v1110_v11 = vadd.f32 %v1179_v51, %v1109_v8 }
 0x37e   :  { %v1319_v24 = vpop.eup %1318 }
 0x37f   :  { %1328 = vrcp.f32 %v1145_v9  ;;  %v1144_v12 = vadd.f32 1.0, %v1319_v24  ;;  %v1186_v25 = vmul.f32 -1.442695, %v1110_v11 }
 0x380   :  { %1330 = vpow2.f32 %v1187_v10 }
 0x381   :  { %1332 = vrcp.f32 %v1144_v12 }
 0x382   :  { %1334 = vpow2.f32 %v1186_v25 }
 0x384   :  { %v1321_v13 = vpop.eup %1320 }
 0x385   :  { %v1323_v14 = vpop.eup %1322  ;;  %1167 = vst [vmem:[%s2473_s9 + $0x8] sm:$0xff] %v1321_v13 }
 0x386   :  { %v1325_v26 = vpop.eup %1324  ;;  %v1147_v27 = vadd.f32 1.0, %v1323_v14 }
 0x387   :  { %v1327_v15 = vpop.eup %1326  ;;  %1166 = vst [vmem:[%s2473_s9] sm:$0xff] %v1325_v26 }
 0x388   :  { %1336 = vrcp.f32 %v1147_v27  ;;  %v1146_v16 = vadd.f32 1.0, %v1327_v15 }
 0x38a   :  { %1338 = vrcp.f32 %v1146_v16 }
 0x38c   :  { %v1329_v17 = vpop.eup %1328 }
 0x38d   :  { %v1331_v19 = vpop.eup %1330  ;;  %1169 = vst [vmem:[%s2473_s9 + $0x18] sm:$0xff] %v1329_v17 }
 0x38e   :  { %v1333_v21 = vpop.eup %1332  ;;  %v1149_v23 = vadd.f32 1.0, %v1331_v19 }
 0x38f   :  { %v1335_v28 = vpop.eup %1334  ;;  %1168 = vst [vmem:[%s2473_s9 + $0x10] sm:$0xff] %v1333_v21 }
 0x390   :  { %1340 = vrcp.f32 %v1149_v23  ;;  %v1148_v29 = vadd.f32 1.0, %v1335_v28 }
 0x392   :  { %1342 = vrcp.f32 %v1148_v29 }
 0x395   :  { %v1337_v30 = vpop.eup %1336 }
 0x396   :  { %1171 = vst [vmem:[%s2473_s9 + $0x28] sm:$0xff] %v1337_v30 }
 0x397   :  { %v1339_v31 = vpop.eup %1338 }
 0x398   :  { %1170 = vst [vmem:[%s2473_s9 + $0x20] sm:$0xff] %v1339_v31 }
 0x39d   :  { %v1341_v32 = vpop.eup %1340 }
 0x39e   :  { %1173 = vst [vmem:[%s2473_s9 + $0x38] sm:$0xff] %v1341_v32 }
 0x39f   :  { %v1343_v33 = vpop.eup %1342 }
 0x3a0   :  { %1172 = vst [vmem:[%s2473_s9 + $0x30] sm:$0xff] %v1343_v33 }

</bundles_post_ra>
